<compile_context>
chip_gen: v6e
topology: v6e:2x2x1
jax: 0.10.0
libtpu: 0.0.40
codegen_flags: <defaults>
</compile_context>

<pallas_src>
import functools
from math import sqrt

import jax
import jax.numpy as jnp
from jax import lax
from jax.experimental import pallas as pl
from jax.experimental.pallas import tpu as pltpu


# -----------------------------------------------------------------------------
# Pass 1: Q / K / V projections, computed ONCE over the sequence.
# -----------------------------------------------------------------------------
def _qkv_proj_kernel(xq_ref, xk_ref, xv_ref, wq_ref, wk_ref, wv_ref,
                     q_out, k_out, v_out, *, scale):
    # Weights already in (in, out) layout -> no on-chip transpose.
    # The softmax scale 1/sqrt(d_head) is folded into Q here.
    q = jnp.dot(xq_ref[0], wq_ref[...], preferred_element_type=jnp.float32)
    q_out[0] = (q * scale).astype(q_out.dtype)
    k_out[0] = jnp.dot(xk_ref[0], wk_ref[...],
                       preferred_element_type=jnp.float32).astype(k_out.dtype)
    v_out[0] = jnp.dot(xv_ref[0], wv_ref[...],
                       preferred_element_type=jnp.float32).astype(v_out.dtype)


# -----------------------------------------------------------------------------
# Pass 2: flash attention over pre-projected Q/K/V + fused output projection.
# -----------------------------------------------------------------------------
def _flash_mha_kernel(q_ref, k_ref, v_ref, wo_ref, bo_ref, o_ref,
                      m_scr, l_scr, acc_scr, *, num_heads):
    # q_ref        : (1, tq, D) projected & pre-scaled Q tile (resident over kv)
    # k_ref, v_ref : (1, tk, D) projected K / V tiles
    # wo_ref       : (D, D) output-projection weight, (in, out) layout
    # bo_ref       : (1, D)  output-projection bias (f32)
    # o_ref        : (1, tq, D) output tile (resident across the kv axis)
    # m_scr, l_scr : (tq, H) f32 running max / running sum per head
    # acc_scr      : (tq, D) f32 unnormalised per-head context (column groups)
    kv_idx = pl.program_id(2)
    n_kv = pl.num_programs(2)

    H = num_heads
    tq, D = acc_scr.shape
    dh = D // H
    cdt = q_ref.dtype  # MXU operand dtype (bf16-native when inputs are bf16)

    @pl.when(kv_idx == 0)
    def _init():
        m_scr[...] = jnp.full_like(m_scr, -jnp.inf)
        l_scr[...] = jnp.zeros_like(l_scr)
        acc_scr[...] = jnp.zeros_like(acc_scr)

    q = q_ref[0]  # (tq, D) — already in operand dtype, no per-step casts
    k = k_ref[0]  # (tk, D)
    v = v_ref[0]  # (tk, D)

    # Contract the last (d_head) axis of both operands: q @ k^T, no transpose.
    qk_dims = (((1,), (1,)), ((), ()))

    # One full (tq, H) read; per-head slices stay in registers.
    m_all = m_scr[...]
    l_all = l_scr[...]

    m_cols, l_cols, acc_cols = [], [], []
    # H is small and static: an unrolled Python loop keeps every slice static,
    # and heads are contiguous column groups (no cross-lane shuffles).
    for h in range(H):
        lo, hi = h * dh, (h + 1) * dh
        s = lax.dot_general(q[:, lo:hi], k[:, lo:hi], qk_dims,
                            preferred_element_type=jnp.float32)  # (tq, tk)
        # TODO(synk): optional attention mask (mask=None path only, matching
        # the PyTorch default); a (tq, tk) mask tile would be applied to `s`.

        m_prev = m_all[:, h:h + 1]
        m_new = jnp.maximum(m_prev, jnp.max(s, axis=-1, keepdims=True))
        alpha = jnp.exp(m_prev - m_new)
        p = jnp.exp(s - m_new)

        l_cols.append(alpha * l_all[:, h:h + 1]
                      + jnp.sum(p, axis=-1, keepdims=True))
        acc_h = alpha * acc_scr[:, lo:hi] + jnp.dot(
            p.astype(cdt), v[:, lo:hi], preferred_element_type=jnp.float32)
        acc_scr[:, lo:hi] = acc_h
        acc_cols.append(acc_h)
        m_cols.append(m_new)

    # Coalesced (tq, H) stores instead of 2*H width-1 masked stores per step.
    m_new_all = jnp.concatenate(m_cols, axis=-1)
    l_new_all = jnp.concatenate(l_cols, axis=-1)
    m_scr[...] = m_new_all
    l_scr[...] = l_new_all

    # ---- last KV tile: softmax normalisation + head merge + output proj -----
    @pl.when(kv_idx == n_kv - 1)
    def _finalize():
        inv_l = pl.reciprocal(l_new_all, approx=True)   # (tq, H), EUP slot
        ctx = jnp.concatenate(
            [acc_cols[h] * inv_l[:, h:h + 1] for h in range(H)],
            axis=-1).astype(cdt)                        # (tq, D) head merge
        out = jnp.dot(ctx, wo_ref[...],
                      preferred_element_type=jnp.float32) + bo_ref[...]
        o_ref[0] = out.astype(o_ref.dtype)


def _vmem_cap_bytes():
    """Per-core VMEM capacity with ~20% headroom for compiler temporaries."""
    try:
        cap = int(pltpu.get_tpu_info().vmem_capacity_bytes)
    except Exception:
        cap = 64 << 20   # conservative fallback (v7x is 64 MiB / TensorCore)
    return int(cap * 0.8)


def multi_head_attention(query, key, value, wq, wk, wv, wo, bo, *,
                         num_heads, q_tile=256, kv_tile=256, proj_tile=256):
    """query/key/value: [B, S, D]; wq/wk/wv/wo: [D, D] PyTorch (out, in); bo: [D].

    For production shapes prefer d_head = D // num_heads >= 128 (full MXU
    width on the per-head contractions).
    """
    B, S, D = query.shape
    assert D % num_heads == 0
    dh = D // num_heads
    dtype = query.dtype
    itemsize = jnp.dtype(dtype).itemsize

    # PyTorch nn.Linear stores W as (out, in); pre-transpose ONCE here so the
    # kernels consume (in, out) and never transpose on-chip.
    wq_t = wq.T.astype(dtype)
    wk_t = wk.T.astype(dtype)
    wv_t = wv.T.astype(dtype)
    wo_t = wo.T.astype(dtype)
    bo2d = bo.reshape(1, D).astype(jnp.float32)

    vmem_cap = _vmem_cap_bytes()

    # ---- pass 1: project Q (pre-scaled), K, V once ---------------------------
    tp = min(proj_tile, S)
    assert S % tp == 0, "wrapper requires S divisible by the projection tile"

    x_spec = pl.BlockSpec((1, tp, D), lambda b, i: (b, i, 0))
    w_spec_p = pl.BlockSpec((D, D), lambda b, i: (0, 0))
    proj_est = (2 * 6 * tp * D + 2 * 3 * D * D) * itemsize
    q_p, k_p, v_p = pl.pallas_call(
        functools.partial(_qkv_proj_kernel, scale=1.0 / sqrt(dh)),
        out_shape=(jax.ShapeDtypeStruct((B, S, D), dtype),
                   jax.ShapeDtypeStruct((B, S, D), dtype),
                   jax.ShapeDtypeStruct((B, S, D), dtype)),
        grid_spec=pltpu.PrefetchScalarGridSpec(
            num_scalar_prefetch=0,
            grid=(B, S // tp),
            in_specs=[x_spec, x_spec, x_spec, w_spec_p, w_spec_p, w_spec_p],
            out_specs=[x_spec, x_spec, x_spec]),
        compiler_params=pltpu.CompilerParams(
            dimension_semantics=("parallel", "parallel"),
            vmem_limit_bytes=min(max(2 * proj_est, 32 << 20), vmem_cap)),
        cost_estimate=pl.CostEstimate(
            flops=int(6 * B * S * D * D),
            transcendentals=0,
            bytes_accessed=int((6 * B * S * D + 3 * D * D) * itemsize)),
    )(query, key, value, wq_t, wk_t, wv_t)

    # ---- pass 2: flash attention + fused output projection -------------------
    tq = min(q_tile, S)
    tk = min(kv_tile, S)
    assert S % tq == 0 and S % tk == 0, "wrapper requires S divisible by tiles"
    # v7x megacore: keep the parallel grid extent B*(S//tq) >= 2 when possible.
    while (B * (S // tq) < 2 and tq > 128 and tq % 2 == 0
           and S % (tq // 2) == 0):
        tq //= 2

    kernel = functools.partial(_flash_mha_kernel, num_heads=num_heads)
    grid = (B, S // tq, S // tk)

    q_spec = pl.BlockSpec((1, tq, D), lambda b, qi, ki: (b, qi, 0))
    kv_spec = pl.BlockSpec((1, tk, D), lambda b, qi, ki: (b, ki, 0))
    # TODO(synk): pipeline_mode=pl.Buffered(1) on the grid-invariant weight /
    # bias specs would drop their double buffers on VMEM-tight generations.
    wo_spec = pl.BlockSpec((D, D), lambda b, qi, ki: (0, 0))
    bo_spec = pl.BlockSpec((1, D), lambda b, qi, ki: (0, 0))
    o_spec = pl.BlockSpec((1, tq, D), lambda b, qi, ki: (b, qi, 0))

    flash_est = (2 * (tq * D + 2 * tk * D + D * D + D) * itemsize   # in bufs
                 + 2 * tq * D * itemsize                            # out bufs
                 + (2 * tq * num_heads + tq * D) * 4)               # scratch
    flash_vmem = min(max(int(flash_est * 1.5), 32 << 20), vmem_cap)

    # Honest cost estimate: attention + output projection flops, and K/V tiles
    # re-streamed once per Q-tile (inherent flash-attention tradeoff).
    n_q_tiles = S // tq
    flash_flops = int(4 * B * S * S * D + 2 * B * S * D * D)
    flash_trans = int(B * num_heads * S * S)
    flash_bytes = int(((2 + 2 * n_q_tiles) * B * S * D + D * D + D) * itemsize)

    return pl.pallas_call(
        kernel,
        out_shape=jax.ShapeDtypeStruct((B, S, D), dtype),
        grid_spec=pltpu.PrefetchScalarGridSpec(
            num_scalar_prefetch=0,
            grid=grid,
            in_specs=[q_spec, kv_spec, kv_spec, wo_spec, bo_spec],
            out_specs=o_spec,
            scratch_shapes=[
                pltpu.VMEM((tq, num_heads), jnp.float32),  # running max / head
                pltpu.VMEM((tq, num_heads), jnp.float32),  # running sum / head
                pltpu.VMEM((tq, D), jnp.float32),          # unnormalised context
            ]),
        compiler_params=pltpu.CompilerParams(
            dimension_semantics=("parallel", "parallel", "arbitrary"),
            vmem_limit_bytes=flash_vmem),
        cost_estimate=pl.CostEstimate(flops=flash_flops,
                                      transcendentals=flash_trans,
                                      bytes_accessed=flash_bytes),
    )(q_p, k_p, v_p, wo_t, bo2d)


def _reference(query, key, value, wq, wk, wv, wo, bo, num_heads):
    """Plain-JAX replica of the PyTorch forward, for verification."""
    B, S, D = query.shape
    dh = D // num_heads

    def proj(x, w):
        return jnp.einsum('bsd,od->bso', x, w)

    def split(x):
        return x.reshape(B, S, num_heads, dh).transpose(0, 2, 1, 3)

    Q, K, V = split(proj(query, wq)), split(proj(key, wk)), split(proj(value, wv))
    scores = jnp.einsum('bhqd,bhkd->bhqk', Q, K) / sqrt(dh)
    p = jax.nn.softmax(scores, axis=-1)
    ctx = jnp.einsum('bhqk,bhkd->bhqd', p, V)
    ctx = ctx.transpose(0, 2, 1, 3).reshape(B, S, D)
    return jnp.einsum('bsd,od->bso', ctx, wo) + bo


if __name__ == "__main__":
    # d_model=128, 4 heads -> d_head=32 (demo only; production wants >=128).
    # Grid: projection (2, 2); flash attention (2, 2, 2).
    B, S, D, H = 2, 512, 128, 4

    key0 = jax.random.PRNGKey(0)
    kq, kk, kv_, kwq, kwk, kwv, kwo, kbo = jax.random.split(key0, 8)

    query = jax.random.normal(kq, (B, S, D), dtype=jnp.float32)
    key_in = jax.random.normal(kk, (B, S, D), dtype=jnp.float32)
    value = jax.random.normal(kv_, (B, S, D), dtype=jnp.float32)

    # Deterministic synthetic parameters (PyTorch nn.Linear shapes: [out, in]).
    wq = jax.random.normal(kwq, (D, D), dtype=jnp.float32) * 0.1
    wk = jax.random.normal(kwk, (D, D), dtype=jnp.float32) * 0.1
    wv = jax.random.normal(kwv, (D, D), dtype=jnp.float32) * 0.1
    wo = jax.random.normal(kwo, (D, D), dtype=jnp.float32) * 0.1
    bo = jax.random.normal(kbo, (D,), dtype=jnp.float32) * 0.1

    out = multi_head_attention(query, key_in, value, wq, wk, wv, wo, bo,
                               num_heads=H)
    out = jax.block_until_ready(out)

    ref = _reference(query, key_in, value, wq, wk, wv, wo, bo, H)
    assert jnp.allclose(out, ref, atol=2e-3, rtol=2e-3), "mismatch vs reference"

    print("KERNEL_OK")
</pallas_src>

<mosaic_0001>
module attributes {stable_mosaic.version = 11 : i64} {
  func.func @_qkv_proj_kernel(%arg0: i32, %arg1: i32, %arg2: memref<1x256x128xf32, #tpu.memory_space<vmem>>, %arg3: memref<1x256x128xf32, #tpu.memory_space<vmem>>, %arg4: memref<1x256x128xf32, #tpu.memory_space<vmem>>, %arg5: memref<128x128xf32, #tpu.memory_space<vmem>>, %arg6: memref<128x128xf32, #tpu.memory_space<vmem>>, %arg7: memref<128x128xf32, #tpu.memory_space<vmem>>, %arg8: memref<1x256x128xf32, #tpu.memory_space<vmem>>, %arg9: memref<1x256x128xf32, #tpu.memory_space<vmem>>, %arg10: memref<1x256x128xf32, #tpu.memory_space<vmem>>) attributes {dimension_semantics = [#tpu.dimension_semantics<parallel>, #tpu.dimension_semantics<parallel>], iteration_bounds = array<i64: 2, 2>, scalar_prefetch = 0 : i64, scratch_operands = 0 : i64, tpu.core_type = #tpu.core_type<tc>, window_params = [{transform_indices = @transform_0, window_bounds = array<i64: 1, 256, 128>}, {transform_indices = @transform_1, window_bounds = array<i64: 1, 256, 128>}, {transform_indices = @transform_2, window_bounds = array<i64: 1, 256, 128>}, {pipeline_mode = #tpu.pipeline_mode<synchronous>, transform_indices = @transform_3, window_bounds = array<i64: 128, 128>}, {pipeline_mode = #tpu.pipeline_mode<synchronous>, transform_indices = @transform_4, window_bounds = array<i64: 128, 128>}, {pipeline_mode = #tpu.pipeline_mode<synchronous>, transform_indices = @transform_5, window_bounds = array<i64: 128, 128>}, {transform_indices = @transform_6, window_bounds = array<i64: 1, 256, 128>}, {transform_indices = @transform_7, window_bounds = array<i64: 1, 256, 128>}, {transform_indices = @transform_8, window_bounds = array<i64: 1, 256, 128>}]} {
    %c0 = arith.constant 0 : index
    %c0_0 = arith.constant 0 : index
    %c0_1 = arith.constant 0 : index
    %0 = vector.load %arg2[%c0, %c0_0, %c0_1] : memref<1x256x128xf32, #tpu.memory_space<vmem>>, vector<1x256x128xf32>
    %1 = vector.shape_cast %0 : vector<1x256x128xf32> to vector<256x128xf32>
    %c0_2 = arith.constant 0 : index
    %c0_3 = arith.constant 0 : index
    %2 = vector.load %arg5[%c0_2, %c0_3] : memref<128x128xf32, #tpu.memory_space<vmem>>, vector<128x128xf32>
    %cst = arith.constant dense<0.000000e+00> : vector<256x128xf32>
    %3 = tpu.matmul %1, %2, %cst {dimension_numbers = #tpu.dot_dimension_numbers<[1], [0], [0], [1], [0, 0, 1, 1], [], []>} : vector<256x128xf32>, vector<128x128xf32>, vector<256x128xf32> -> vector<256x128xf32>
    %cst_4 = arith.constant 0.176776692 : f32
    %4 = vector.broadcast %cst_4 : f32 to vector<256x128xf32>
    %5 = arith.mulf %3, %4 : vector<256x128xf32>
    %c0_5 = arith.constant 0 : index
    %c0_6 = arith.constant 0 : index
    %c0_7 = arith.constant 0 : index
    %6 = vector.load %arg8[%c0_5, %c0_6, %c0_7] : memref<1x256x128xf32, #tpu.memory_space<vmem>>, vector<1x256x128xf32>
    %7 = vector.shape_cast %6 : vector<1x256x128xf32> to vector<256x128xf32>
    %8 = vector.shape_cast %5 : vector<256x128xf32> to vector<1x256x128xf32>
    tpu.vector_store %arg8[%c0_5, %c0_6, %c0_7], %8 {strides = array<i32>} : memref<1x256x128xf32, #tpu.memory_space<vmem>>, vector<1x256x128xf32>,
    %c0_8 = arith.constant 0 : index
    %c0_9 = arith.constant 0 : index
    %c0_10 = arith.constant 0 : index
    %9 = vector.load %arg3[%c0_8, %c0_9, %c0_10] : memref<1x256x128xf32, #tpu.memory_space<vmem>>, vector<1x256x128xf32>
    %10 = vector.shape_cast %9 : vector<1x256x128xf32> to vector<256x128xf32>
    %c0_11 = arith.constant 0 : index
    %c0_12 = arith.constant 0 : index
    %11 = vector.load %arg6[%c0_11, %c0_12] : memref<128x128xf32, #tpu.memory_space<vmem>>, vector<128x128xf32>
    %cst_13 = arith.constant dense<0.000000e+00> : vector<256x128xf32>
    %12 = tpu.matmul %10, %11, %cst_13 {dimension_numbers = #tpu.dot_dimension_numbers<[1], [0], [0], [1], [0, 0, 1, 1], [], []>} : vector<256x128xf32>, vector<128x128xf32>, vector<256x128xf32> -> vector<256x128xf32>
    %c0_14 = arith.constant 0 : index
    %c0_15 = arith.constant 0 : index
    %c0_16 = arith.constant 0 : index
    %13 = vector.load %arg9[%c0_14, %c0_15, %c0_16] : memref<1x256x128xf32, #tpu.memory_space<vmem>>, vector<1x256x128xf32>
    %14 = vector.shape_cast %13 : vector<1x256x128xf32> to vector<256x128xf32>
    %15 = vector.shape_cast %12 : vector<256x128xf32> to vector<1x256x128xf32>
    tpu.vector_store %arg9[%c0_14, %c0_15, %c0_16], %15 {strides = array<i32>} : memref<1x256x128xf32, #tpu.memory_space<vmem>>, vector<1x256x128xf32>,
    %c0_17 = arith.constant 0 : index
    %c0_18 = arith.constant 0 : index
    %c0_19 = arith.constant 0 : index
    %16 = vector.load %arg4[%c0_17, %c0_18, %c0_19] : memref<1x256x128xf32, #tpu.memory_space<vmem>>, vector<1x256x128xf32>
    %17 = vector.shape_cast %16 : vector<1x256x128xf32> to vector<256x128xf32>
    %c0_20 = arith.constant 0 : index
    %c0_21 = arith.constant 0 : index
    %18 = vector.load %arg7[%c0_20, %c0_21] : memref<128x128xf32, #tpu.memory_space<vmem>>, vector<128x128xf32>
    %cst_22 = arith.constant dense<0.000000e+00> : vector<256x128xf32>
    %19 = tpu.matmul %17, %18, %cst_22 {dimension_numbers = #tpu.dot_dimension_numbers<[1], [0], [0], [1], [0, 0, 1, 1], [], []>} : vector<256x128xf32>, vector<128x128xf32>, vector<256x128xf32> -> vector<256x128xf32>
    %c0_23 = arith.constant 0 : index
    %c0_24 = arith.constant 0 : index
    %c0_25 = arith.constant 0 : index
    %20 = vector.load %arg10[%c0_23, %c0_24, %c0_25] : memref<1x256x128xf32, #tpu.memory_space<vmem>>, vector<1x256x128xf32>
    %21 = vector.shape_cast %20 : vector<1x256x128xf32> to vector<256x128xf32>
    %22 = vector.shape_cast %19 : vector<256x128xf32> to vector<1x256x128xf32>
    tpu.vector_store %arg10[%c0_23, %c0_24, %c0_25], %22 {strides = array<i32>} : memref<1x256x128xf32, #tpu.memory_space<vmem>>, vector<1x256x128xf32>,
    return
  }
  func.func @transform_0(%arg0: i32, %arg1: i32) -> (i32, i32, i32) {
    %c0_i32 = arith.constant 0 : i32
    %c0_i32_0 = arith.constant 0 : i32
    return %arg0, %arg1, %c0_i32 : i32, i32, i32
  }
  func.func @transform_1(%arg0: i32, %arg1: i32) -> (i32, i32, i32) {
    %c0_i32 = arith.constant 0 : i32
    %c0_i32_0 = arith.constant 0 : i32
    return %arg0, %arg1, %c0_i32 : i32, i32, i32
  }
  func.func @transform_2(%arg0: i32, %arg1: i32) -> (i32, i32, i32) {
    %c0_i32 = arith.constant 0 : i32
    %c0_i32_0 = arith.constant 0 : i32
    return %arg0, %arg1, %c0_i32 : i32, i32, i32
  }
  func.func @transform_3(%arg0: i32, %arg1: i32) -> (i32, i32) {
    %c0_i32 = arith.constant 0 : i32
    %c0_i32_0 = arith.constant 0 : i32
    %c0_i32_1 = arith.constant 0 : i32
    return %c0_i32, %c0_i32_0 : i32, i32
  }
  func.func @transform_4(%arg0: i32, %arg1: i32) -> (i32, i32) {
    %c0_i32 = arith.constant 0 : i32
    %c0_i32_0 = arith.constant 0 : i32
    %c0_i32_1 = arith.constant 0 : i32
    return %c0_i32, %c0_i32_0 : i32, i32
  }
  func.func @transform_5(%arg0: i32, %arg1: i32) -> (i32, i32) {
    %c0_i32 = arith.constant 0 : i32
    %c0_i32_0 = arith.constant 0 : i32
    %c0_i32_1 = arith.constant 0 : i32
    return %c0_i32, %c0_i32_0 : i32, i32
  }
  func.func @transform_6(%arg0: i32, %arg1: i32) -> (i32, i32, i32) {
    %c0_i32 = arith.constant 0 : i32
    %c0_i32_0 = arith.constant 0 : i32
    return %arg0, %arg1, %c0_i32 : i32, i32, i32
  }
  func.func @transform_7(%arg0: i32, %arg1: i32) -> (i32, i32, i32) {
    %c0_i32 = arith.constant 0 : i32
    %c0_i32_0 = arith.constant 0 : i32
    return %arg0, %arg1, %c0_i32 : i32, i32, i32
  }
  func.func @transform_8(%arg0: i32, %arg1: i32) -> (i32, i32, i32) {
    %c0_i32 = arith.constant 0 : i32
    %c0_i32_0 = arith.constant 0 : i32
    return %arg0, %arg1, %c0_i32 : i32, i32, i32
  }
}

</mosaic_0001>

<bundles_post_ra>
// kernel: tpu_custom_call.1
= control target key start
LH: loop header
LB: loop body
LE: loop exit
PB: predicated region body
PF: predicated region fallthrough
CT: control target
= control target key end

     0   :  { %s3304_s0 = inlined_call_operand.hbm [shape: f32[2,512,128], index: 0, kind: input, shape index: {}]   ;;  %s3305_s1 = inlined_call_operand.hbm [shape: f32[2,512,128], index: 1, kind: input, shape index: {}]   ;;  %s3306_s2 = inlined_call_operand.hbm [shape: f32[2,512,128], index: 2, kind: input, shape index: {}]   ;;  %s3307_s3 = inlined_call_operand.hbm [shape: f32[128,128], index: 3, kind: input, shape index: {}]   ;;  %s3308_s4 = inlined_call_operand.hbm [shape: f32[128,128], index: 4, kind: input, shape index: {}]   ;;  %s3309_s5 = inlined_call_operand.hbm [shape: f32[128,128], index: 5, kind: input, shape index: {}]   ;;  %s3310_s6 = inlined_call_operand.hbm [shape: f32[2,512,128], index: 6, kind: output, shape index: {0}]   ;;  %s3311_s7 = inlined_call_operand.hbm [shape: f32[2,512,128], index: 7, kind: output, shape index: {1}]   ;;  %s3312_s8 = inlined_call_operand.hbm [shape: f32[2,512,128], index: 8, kind: output, shape index: {2}]  }
   0x1   :  { %3331 = sst [smem:[#allocation30_spill]] %s3305_s1 }
   0x2   :  { %3332 = sst [smem:[#allocation31_spill]] %s3307_s3 }
   0x3   :  { %3333 = sst [smem:[#allocation32_spill]] %s3308_s4 }
   0x4   :  { %3334 = sst [smem:[#allocation33_spill]] %s3310_s6 }
   0x5   :  { %3335 = sst [smem:[#allocation34_spill]] %s3311_s7 }
   0x6   :  { %3336 = sst [smem:[#allocation35_spill]] %s3312_s8 }
   0x7   :  { %14 = vsyncpa [#allocation3], 0 }
   0x8   :  { %16 = vsyncpa [#allocation3 + $0x1], 0 }
   0x9   :  { %17 = vsyncpa [#allocation6], 0 }
   0xa   :  { %19 = vsyncpa [#allocation6 + $0x1], 0 }
   0xb   :  { %20 = vsyncpa [#allocation9], 0 }
   0xc   :  { %21 = vsyncpa [#allocation12], 0 }
   0xd   :  { %22 = vsyncpa [#allocation4], 0 }
   0xe   :  { %24 = vsyncpa [#allocation4 + $0x1], 0 }
   0xf   :  { %25 = vsyncpa [#allocation15], 0 }
  0x10   :  { %27 = vsyncpa [#allocation15 + $0x1], 0  ;;  %s2721_s27 = smov 0   ;;  %s2723_s28 = smov 0  }
  0x11   :  { %s2725_s29 = smov 0   ;;  %s2727_s30 = smov 0  }
  0x12   :  { %s2729_s9 = smov 0   ;;  %s2731_s10 = smov 0  }
  0x13   :  { %s2733_s11 = smov 0   ;;  %s2735_s12 = smov 0  }
  0x14 LB: > { %3337 = sst [smem:[#allocation23_spill]] %s2633_s27  ;;  %s2762_s13 = sadd.s32 4294967295, %s2661_s12   ;;  %s2661_s12 = sphi %s2735_s12, %s33_s12   ;;  %s2657_s11 = sphi %s2733_s11, %s3379_s11   ;;  %s2653_s10 = sphi %s2731_s10, %s3373_s10   ;;  %s2649_s9 = sphi %s2729_s9, %s3378_s9   ;;  %s2645_s30 = sphi %s2727_s30, %s3372_s30   ;;  %s2641_s29 = sphi %s2725_s29, %s3377_s29   ;;  %s2637_s28 = sphi %s2723_s28, %s3376_s28   ;;  %s2633_s27 = sphi %s2721_s27, %s3375_s27  }
  0x15   : > { %3338 = sst [smem:[#allocation24_spill]] %s2649_s9  ;;  %s3314_s14 = sadd.s32 4294967294, %s2661_s12  }
  0x16   : > { %3339 = sst [smem:[#allocation25_spill]] %s2653_s10  ;;  %p61_p0 = scmp.ne.s32.totalorder %s2641_s29, %s2637_s28 }
  0x17   : > { %p62_p1 = scmp.eq.s32.totalorder %s2661_s12, 0  ;;  %p67_p2 = scmp.ne.s32.totalorder %s2637_s28, %s2633_s27 }
  0x18   : > { %p3329_p3 = scmp.eq.s32.totalorder %s2762_s13, 0  ;;  %p212_p4 = scmp.eq.s32.totalorder %s2762_s13, 3 }
  0x19   : > { %p2773_p5 = por %p62_p1, %p61_p0  ;;  %p218_p6 = scmp.eq.s32.totalorder %s3314_s14, 3 }
  0x1a   : > { %p2781_p7 = por %p3329_p3, %p67_p2  ;;  %p2785_p8 = por %p212_p4, %p61_p0 }
  0x1b   : > { %p2789_p9 = por %p218_p6, %p67_p2  ;;  %p1745_p10 = scmp.ge.s32.totalorder %s2661_s12, 1 }
  0x1c   : > { %s3342_s18 = scalar_select %p2785_p8, 1, 0 }
  0x1d   : > { %s3344_s19 = scalar_select %p2789_p9, 1, 0 }
  0x1e   : > { %3343 = sst [smem:[#allocation26_spill]] %s3342_s18  ;;  %p281_p11 = scmp.lt.s32.totalorder %s2661_s12, 5 }
  0x1f   : > { %3345 = sst [smem:[#allocation27_spill]] %s3344_s19  ;;  %s2663_s21 = smov [#allocation8]  }
  0x20   : > { %p2795_p12 = pnand %p1745_p10, %p281_p11  ;;  %s293_s22 = sshll.u32 %s2663_s21, 4  ;;  %s294_s22 = int_to_ptr.vmem [resolvable:$true] %s293_s22 }
  0x21   : > { %s45_s24 = sadd.s32 1, %s2657_s11  ;;  %s42_s25 = sadd.s32 1, %s2653_s10 }
  0x22   : > { %p2226_p13 = pneg %p2795_p12  ;;  %s2346_s26 = scalar_lea.vmem %s294_s22, 2048 }
  0x23   : > { %p2347_p2 = scmp.ne.s32.totalorder %s294_s22, %s2346_s26  ;;  %p2354_p10 = scmp.lt.s32.totalorder %s294_s22, %s294_s22 }
  0x24   : > { %p2803_p0 = pnand %p2226_p13, %p3329_p3  ;;  %p2355_p11 = scmp.lt.s32.totalorder %s2346_s26, %s2346_s26 }
  0x26   : > { %p2337_p1 = pneg %p2803_p0  ;;  %p2356_p9 = por %p2355_p11, %p2354_p10 }
  0x28   : > { %p2349_p4 = pnand %p2347_p2, %p2337_p1 }
  0x2a   : > { %p2350_p6 = pneg %p2349_p4 }
  0x2c   : > { %p2357_p8 = pnand %p2356_p9, %p2350_p6 }
  0x2e   : > { %2360 = shalt.err (!%p2357_p8)
}
  0x2f   : > { %s3319_s21 = smov 128   ;;  %s3321_s14 = smov 8  }
  0x30   : > { %s3348_s3 = sld [smem:[#allocation31_spill]]  ;;  %p43_p8 = scmp.ge.s32.totalorder %s42_s25, 2 }
  0x31   : > { %p2259_p9 = scmp.lt.s32.totalorder %s2661_s12, 4  ;;  %s3323_s19 = sand.u32 1, %s2641_s29  }
  0x32   : > { %s1751_s27 = sshll.u32 %s2653_s10, 5  ;;  %s3381_s25 = smov (%p43_p8, %s42_s25), 0 }
  0x33   : > { %3349 = sst [smem:[#allocation28_spill]] %s3381_s25  ;;  %s3383_s24 = smov (!%p43_p8, %s45_s24), %s2657_s11 }
  0x34   : > { %s50_s8 = ssub.s32 %s2653_s10, %s3381_s25  ;;  %s2832_s7 = sshll.u32 %s3323_s19, 8 }
  0x35   : > { %p47_p13 = scmp.ge.s32.totalorder %s3383_s24, 2  ;;  %s1752_s15 = sshll.u32 %s2657_s11, 6 }
  0x36   : > { %2229 = dma.hbm_to_vmem [thread:$0]  (!%p2803_p0), %s3348_s3, 2048, %s294_s22, [#allocation9], %s3319_s21, %s3319_s21, %s3321_s14  }
  0x37   : > { %s343_s26 = sadd.s32 %s1752_s15, %s1751_s27  ;;  %p2837_p2 = pnand %p2259_p9, %p2773_p5 }
  0x38   : > { %s3385_s24 = smov (%p47_p13, %s3383_s24), 0  ;;  %s2843_s21 = sshll.u32 %s343_s26, 7 }
  0x39   : > { %3351 = sst [smem:[#allocation29_spill]] %s3385_s24  ;;  %s49_s14 = ssub.s32 %s2657_s11, %s3385_s24 }
  0x3a   : > { %s356_s19 = sand.u32 1, %s2661_s12   ;;  %s51_s3 = sor.u32 %s50_s8, %s49_s14 }
  0x3b   : > { %p52_p4 = scmp.eq.s32.totalorder %s51_s3, 0  ;;  %s3352_s1 = sld [smem:[#allocation30_spill]] }
  0x3c   : > { %s360_s16 = scalar_lea.vmem [#allocation5], %s2832_s7  ;;  %s3353_s6 = sadd.s32 1, %s2641_s29 }
  0x3d   : > { %s369_s15 = sshll.u32 %s360_s16, 4  ;;  %s2858_s9 = scalar_lea.sflag [#allocation6], %s356_s19  ;;  %s370_s15 = int_to_ptr.vmem [resolvable:$true] %s369_s15 }
  0x3e   : > { %s2856_s18 = scalar_select %p52_p4, %s2641_s29, %s3353_s6  }
  0x3f   : > { %p2363_p5 = pneg %p2837_p2  ;;  %s2374_s26 = scalar_lea.vmem %s370_s15, 4096 }
  0x40   : > { %p2375_p6 = scmp.ne.s32.totalorder %s370_s15, %s2374_s26  ;;  %s2666_s3 = smov [#allocation5]  }
  0x41   : > { %s368_s27 = scalar_lea.hbm %s3352_s1, %s2843_s21  ;;  %s2379_s8 = sshll.u32 %s2666_s3, 4  ;;  %s2380_s8 = int_to_ptr.vmem [resolvable:$false] %s2379_s8 }
  0x42   : > { %p2377_p10 = pnand %p2375_p6, %p2363_p5  ;;  %s2381_s10 = scalar_lea.vmem %s2380_s8, 8192 }
  0x43   : > { %p2382_p8 = scmp.lt.s32.totalorder %s370_s15, %s2380_s8  ;;  %p2383_p9 = scmp.lt.s32.totalorder %s2381_s10, %s2374_s26 }
  0x44   : > { %p2378_p11 = pneg %p2377_p10 }
  0x45   : > { %p2384_p13 = por %p2383_p9, %p2382_p8 }
  0x47   : > { %p2385_p4 = pnand %p2384_p13, %p2378_p11 }
  0x49   : > { %2388 = shalt.err (!%p2385_p4)
}
  0x4a   : > { %s3354_s6 = smov 8   ;;  %s3355_s14 = smov 128  }
  0x4b   : > { %2242 = dma.hbm_to_vmem [thread:$0]  (!%p2837_p2), %s368_s27, 4096, %s370_s15, %s2858_s9, %s3355_s14, %s3355_s14, %s3354_s6  }
  0x4c   : > { %s2667_s19 = smov [#allocation10]   ;;  %s2668_s16 = smov [#allocation11]  }
  0x4d   : > { %s306_s25 = sshll.u32 %s2667_s19, 4  ;;  %s319_s3 = sshll.u32 %s2668_s16, 4  ;;  %s307_s25 = int_to_ptr.vmem [resolvable:$true] %s306_s25  ;;  %s320_s3 = int_to_ptr.vmem [resolvable:$true] %s319_s3 }
  0x4e   : > { %s2400_s1 = scalar_lea.vmem %s307_s25, 2048  ;;  %p2408_p8 = scmp.lt.s32.totalorder %s307_s25, %s307_s25 }
  0x4f   : > { %p2401_p6 = scmp.ne.s32.totalorder %s307_s25, %s2400_s1  ;;  %p2409_p9 = scmp.lt.s32.totalorder %s2400_s1, %s2400_s1 }
  0x51   : > { %p2403_p10 = pnand %p2401_p6, %p2337_p1  ;;  %p2410_p13 = por %p2409_p9, %p2408_p8 }
  0x53   : > { %p2404_p11 = pneg %p2403_p10 }
  0x55   : > { %p2411_p4 = pnand %p2410_p13, %p2404_p11 }
  0x57   : > { %2414 = shalt.err (!%p2411_p4)
}
  0x58   : > { %s3356_s4 = sld [smem:[#allocation32_spill]]  ;;  %s2426_s26 = scalar_lea.vmem %s320_s3, 2048 }
  0x59   : > { %p2427_p3 = scmp.ne.s32.totalorder %s320_s3, %s2426_s26  ;;  %p2434_p8 = scmp.lt.s32.totalorder %s320_s3, %s320_s3 }
  0x5a   : > { %p2435_p11 = scmp.lt.s32.totalorder %s2426_s26, %s2426_s26 }
  0x5b   : > { %p2429_p6 = pnand %p2427_p3, %p2337_p1 }
  0x5c   : > { %p2436_p9 = por %p2435_p11, %p2434_p8 }
  0x5d   : > { %p2430_p10 = pneg %p2429_p6 }
  0x5e   : > { %2232 = dma.hbm_to_vmem [thread:$0]  (!%p2803_p0), %s3356_s4, 2048, %s307_s25, [#allocation9], %s3355_s14, %s3355_s14, %s3354_s6  }
  0x5f   : > { %p2437_p13 = pnand %p2436_p9, %p2430_p10 }
  0x61   : > { %2440 = shalt.err (!%p2437_p13)
}
  0x62   : > { %2235 = dma.hbm_to_vmem [thread:$0]  (!%p2803_p0), %s3309_s5, 2048, %s320_s3, [#allocation12], %s3355_s14, %s3355_s14, %s3354_s6  }
  0x63   : > { %s345_s25 = scalar_lea.hbm %s3304_s0, %s2843_s21  ;;  %s337_s16 = scalar_lea.vmem [#allocation2], %s2832_s7 }
  0x64   : > { %s346_s27 = sshll.u32 %s337_s16, 4  ;;  %s391_s26 = scalar_lea.hbm %s3306_s2, %s2843_s21  ;;  %s347_s27 = int_to_ptr.vmem [resolvable:$true] %s346_s27 }
  0x65   : > { %s3357_s4 = sand.u32 1, %s2641_s29   ;;  %s2454_s1 = scalar_lea.vmem %s347_s27, 4096 }
  0x66   : > { %s334_s24 = scalar_lea.sflag [#allocation3], %s3357_s4  ;;  %p2455_p3 = scmp.ne.s32.totalorder %s347_s27, %s2454_s1 }
  0x67   : > { %s2669_s3 = smov [#allocation2]  }
  0x68   : > { %p2457_p1 = pnand %p2455_p3, %p2363_p5  ;;  %s2459_s8 = sshll.u32 %s2669_s3, 4  ;;  %s2460_s8 = int_to_ptr.vmem [resolvable:$false] %s2459_s8 }
  0x69   : > { %s2461_s10 = scalar_lea.vmem %s2460_s8, 8192  ;;  %p2462_p0 = scmp.lt.s32.totalorder %s347_s27, %s2460_s8 }
  0x6a   : > { %p2458_p4 = pneg %p2457_p1  ;;  %p2463_p6 = scmp.lt.s32.totalorder %s2461_s10, %s2454_s1 }
  0x6c   : > { %p2464_p10 = por %p2463_p6, %p2462_p0 }
  0x6e   : > { %p2465_p8 = pnand %p2464_p10, %p2458_p4 }
  0x70   : > { %2468 = shalt.err (!%p2465_p8)
}
  0x71   : > { %2239 = dma.hbm_to_vmem [thread:$0]  (!%p2837_p2), %s345_s25, 4096, %s347_s27, %s334_s24, %s3355_s14, %s3355_s14, %s3354_s6  }
  0x72   : > { %s383_s4 = scalar_lea.vmem [#allocation7], %s2832_s7  ;;  %s2670_s23 = smov [#allocation7]  }
  0x73   : > { %s392_s19 = sshll.u32 %s383_s4, 4  ;;  %s2487_s15 = sshll.u32 %s2670_s23, 4  ;;  %s393_s19 = int_to_ptr.vmem [resolvable:$true] %s392_s19  ;;  %s2488_s15 = int_to_ptr.vmem [resolvable:$false] %s2487_s15 }
  0x74   : > { %s2482_s16 = scalar_lea.vmem %s393_s19, 4096  ;;  %s2489_s1 = scalar_lea.vmem %s2488_s15, 8192 }
  0x75   : > { %p2483_p11 = scmp.ne.s32.totalorder %s393_s19, %s2482_s16  ;;  %p2490_p3 = scmp.lt.s32.totalorder %s393_s19, %s2488_s15 }
  0x76   : > { %p2491_p1 = scmp.lt.s32.totalorder %s2489_s1, %s2482_s16 }
  0x77   : > { %p2485_p9 = pnand %p2483_p11, %p2363_p5 }
  0x78   : > { %p2492_p4 = por %p2491_p1, %p2490_p3 }
  0x79   : > { %p2486_p13 = pneg %p2485_p9 }
  0x7b   : > { %p2493_p0 = pnand %p2492_p4, %p2486_p13 }
  0x7d   : > { %2496 = shalt.err (!%p2493_p0)
}
  0x7e   : > { %2245 = dma.hbm_to_vmem [thread:$0]  (!%p2837_p2), %s391_s26, 4096, %s393_s19, %s2858_s9, %s3355_s14, %s3355_s14, %s3354_s6  }
  0x7f   : > { %404 = sbr.rel (%p2795_p12) target bundleno = 524 (0x20c), region = 44  ;;  %s2930_s25 = sand.u32 (!%p2795_p12), 1, %s2637_s28  }
  0x80   : > { %s2933_s22 = sshll.u32 (!%p2795_p12), %s2930_s25, 8  ;;  %s407_s27 = scalar_lea.sflag (!%p2795_p12), [#allocation3], %s2930_s25 }
  0x81   : > { %s2937_s3 = scalar_lea.vmem (!%p2795_p12), [#allocation2], %s2933_s22 }
  0x84   : > { %2608 = dma.done.wait (%p2781_p7), %s407_s27, 4096  }
  0x85   : > { %2610 = vsyncadd (%p2781_p7), %s407_s27, 4294963200  ;;  %s415_s9 = sand.u32 1, %s2762_s13   ;;  %s2947_s21 = scalar_lea.vmem [#allocation5], %s2933_s22 }
  0x86   : > { %s416_s20 = scalar_lea.sflag [#allocation6], %s415_s9 }
  0x87   : > { %2612 = dma.done.wait (%p2781_p7), %s416_s20, 8192  }
  0x88   : > { %2614 = vsyncadd (%p2781_p7), %s416_s20, 4294959104  ;;  %s2954_s6 = scalar_lea.vmem [#allocation7], %s2933_s22  ;;  %p3358_p12 = scmp.eq.s32.totalorder %s2762_s13, 0 }
  0x8a   : > { %2616 = dma.done.wait (%p3358_p12), [#allocation9], 4096   ;;  %p3359_p2 = pmov %p3358_p12 }
  0x8c   : > { %2618 = vsyncadd (%p3359_p2), [#allocation9], 4294963200  ;;  %p3360_p5 = pmov %p3359_p2 }
  0x8d   : > { %p3361_p6 = pmov %p3359_p2 }
  0x8e   : > { %2620 = dma.done.wait (%p3360_p5), [#allocation12], 2048  }
  0x8f   : > { %2622 = vsyncadd (%p3361_p6), [#allocation12], 4294965248  ;;  %v546_v0 = vld [vmem:[#allocation8 + $0x78] sm:$0xff]  ;;  %v545_v1 = vld [vmem:[#allocation8 + $0x70] sm:$0xff]  ;;  %s3061_s17 = scalar_lea.vmem [#allocation13], %s2933_s22  ;;  %s3362_s14 = sld [smem:[#allocation24_spill]] }
  0x90   : > { %1930 = vmatprep.subr.mxu0 %v546_v0  ;;  %2170 = vmatprep.subr.mxu1 %v546_v0  ;;  %v544_v2 = vld [vmem:[#allocation8 + $0x68] sm:$0xff]  ;;  %v543_v3 = vld [vmem:[#allocation8 + $0x60] sm:$0xff]  ;;  %v542_v4 = vld [vmem:[#allocation8 + $0x58] sm:$0xff]  ;;  %s1775_s26 = sshll.u32 %s2645_s30, 5  ;;  %s1472_s4 = sshll.u32 %s3061_s17, 4  ;;  %s3104_s4 = int_to_ptr.vmem [resolvable:$true] %s1472_s4 }
  0x91   : > { %1931 = vmatpush3.msra.mxu0 %v546_v0  ;;  %2186 = vmatpush3.msra.mxu1 %v546_v0  ;;  %v541_v5 = vld [vmem:[#allocation8 + $0x50] sm:$0xff]  ;;  %v540_v6 = vld [vmem:[#allocation8 + $0x48] sm:$0xff]  ;;  %v539_v7 = vld [vmem:[#allocation8 + $0x40] sm:$0xff]  ;;  %s3363_s19 = sld [smem:[#allocation26_spill]]  ;;  %s1447_s7 = scalar_lea.sflag [#allocation4], %s2930_s25 }
  0x92   : > { %1932 = vmatprep.subr.mxu0 %v545_v1  ;;  %2171 = vmatprep.subr.mxu1 %v545_v1  ;;  %v538_v8 = vld [vmem:[#allocation8 + $0x38] sm:$0xff]  ;;  %v537_v9 = vld [vmem:[#allocation8 + $0x30] sm:$0xff]  ;;  %v536_v10 = vld [vmem:[#allocation8 + $0x28] sm:$0xff]  ;;  %s3364_s15 = sld [smem:[#allocation33_spill]]  ;;  %s2497_s24 = scalar_lea.vmem %s3104_s4, 4096 }
  0x93   : > { %1933 = vmatpush3.msra.mxu0 %v545_v1  ;;  %2187 = vmatpush3.msra.mxu1 %v545_v1  ;;  %v535_v11 = vld [vmem:[#allocation8 + $0x20] sm:$0xff]  ;;  %v534_v12 = vld [vmem:[#allocation8 + $0x18] sm:$0xff]  ;;  %v533_v13 = vld [vmem:[#allocation8 + $0x10] sm:$0xff]  ;;  %p2498_p7 = scmp.ne.s32.totalorder %s3104_s4, %s2497_s24  ;;  %s2671_s27 = smov [#allocation13]  }
  0x94   : > { %1934 = vmatprep.subr.mxu0 %v544_v2  ;;  %2172 = vmatprep.subr.mxu1 %v544_v2  ;;  %v532_v14 = vld [vmem:[#allocation8 + $0x8] sm:$0xff]  ;;  %v531_v15 = vld [vmem:[#allocation8] sm:$0xff]  ;;  %v883_v20 = vld [vmem:[#allocation10 + $0x78] sm:$0xff] }
  0x95   : > { %1935 = vmatpush3.msra.mxu0 %v544_v2  ;;  %2188 = vmatpush3.msra.mxu1 %v544_v2  ;;  %v499_v16 = vld [vmem:[%s2937_s3] sm:$0xff]  ;;  %v500_v18 = vld [vmem:[%s2937_s3 + $0x8] sm:$0xff]  ;;  %v1188_v21 = vld [vmem:[#allocation11 + $0x78] sm:$0xff]  ;;  %s1776_s8 = sshll.u32 %s3362_s14, 6 }
  0x96   : > { %1936 = vmatprep.subr.mxu0 %v543_v3  ;;  %2173 = vmatprep.subr.mxu1 %v543_v3  ;;  %v515_v17 = vld [vmem:[%s2937_s3 + $0x80] sm:$0xff]  ;;  %v516_v19 = vld [vmem:[%s2937_s3 + $0x88] sm:$0xff]  ;;  %v882_v22 = vld [vmem:[#allocation10 + $0x70] sm:$0xff]  ;;  %s1469_s10 = sadd.s32 %s1776_s8, %s1775_s26 }
  0x97   : > { %1937 = vmatpush3.msra.mxu0 %v543_v3  ;;  %2189 = vmatpush3.msra.mxu1 %v543_v3  ;;  %v1187_v23 = vld [vmem:[#allocation11 + $0x70] sm:$0xff]  ;;  %v502_v26 = vld [vmem:[%s2937_s3 + $0x18] sm:$0xff]  ;;  %v881_v28 = vld [vmem:[#allocation10 + $0x68] sm:$0xff]  ;;  %s3093_s30 = sshll.u32 %s1469_s10, 7  ;;  %p3365_p10 = scmp.ne.s32.totalorder %s3363_s19, 0 }
  0x98   : > { %1938 = vmatprep.subr.mxu0 %v542_v4  ;;  %2174 = vmatprep.subr.mxu1 %v542_v4  ;;  %v501_v24 = vld [vmem:[%s2937_s3 + $0x10] sm:$0xff]  ;;  %v518_v27 = vld [vmem:[%s2937_s3 + $0x98] sm:$0xff]  ;;  %v1186_v29 = vld [vmem:[#allocation11 + $0x68] sm:$0xff]  ;;  %s3102_s1 = scalar_lea.hbm %s3364_s15, %s3093_s30 }
  0x99   : > { %1939 = vmatpush3.msra.mxu0 %v542_v4  ;;  %2190 = vmatpush3.msra.mxu1 %v542_v4  ;;  %v517_v25 = vld [vmem:[%s2937_s3 + $0x90] sm:$0xff]  ;;  %v880_v30 = vld [vmem:[#allocation10 + $0x60] sm:$0xff]  ;;  %v504_v34 = vld [vmem:[%s2937_s3 + $0x28] sm:$0xff]  ;;  %p2499_p8 = pnand %p2498_p7, %p3365_p10 }
  0x9a   : > { %1940 = vmatprep.subr.mxu0 %v541_v5  ;;  %2175 = vmatprep.subr.mxu1 %v541_v5  ;;  %v1185_v31 = vld [vmem:[#allocation11 + $0x60] sm:$0xff]  ;;  %v520_v35 = vld [vmem:[%s2937_s3 + $0xa8] sm:$0xff]  ;;  %v879_v36 = vld [vmem:[#allocation10 + $0x58] sm:$0xff] }
  0x9b   : > { %1941 = vmatpush3.msra.mxu0 %v541_v5  ;;  %2191 = vmatpush3.msra.mxu1 %v541_v5  ;;  %v503_v32 = vld [vmem:[%s2937_s3 + $0x20] sm:$0xff]  ;;  %v1184_v37 = vld [vmem:[#allocation11 + $0x58] sm:$0xff]  ;;  %v878_v38 = vld [vmem:[#allocation10 + $0x50] sm:$0xff]  ;;  %p2500_p11 = pneg %p2499_p8 }
  0x9c   : > { %1942 = vmatprep.subr.mxu0 %v540_v6  ;;  %2176 = vmatprep.subr.mxu1 %v540_v6  ;;  %v519_v33 = vld [vmem:[%s2937_s3 + $0xa0] sm:$0xff]  ;;  %v1183_v39 = vld [vmem:[#allocation11 + $0x50] sm:$0xff]  ;;  %v506_v42 = vld [vmem:[%s2937_s3 + $0x38] sm:$0xff] }
  0x9d   : > { %1943 = vmatpush3.msra.mxu0 %v540_v6  ;;  %2192 = vmatpush3.msra.mxu1 %v540_v6  ;;  %v505_v40 = vld [vmem:[%s2937_s3 + $0x30] sm:$0xff]  ;;  %v522_v43 = vld [vmem:[%s2937_s3 + $0xb8] sm:$0xff]  ;;  %v877_v44 = vld [vmem:[#allocation10 + $0x48] sm:$0xff] }
  0x9e   : > { %1944 = vmatprep.subr.mxu0 %v539_v7  ;;  %2177 = vmatprep.subr.mxu1 %v539_v7  ;;  %v521_v41 = vld [vmem:[%s2937_s3 + $0xb0] sm:$0xff]  ;;  %v1182_v45 = vld [vmem:[#allocation11 + $0x48] sm:$0xff]  ;;  %v876_v46 = vld [vmem:[#allocation10 + $0x40] sm:$0xff] }
  0x9f   : > { %1945 = vmatpush3.msra.mxu0 %v539_v7  ;;  %2193 = vmatpush3.msra.mxu1 %v539_v7  ;;  %v1181_v47 = vld [vmem:[#allocation11 + $0x40] sm:$0xff]  ;;  %v508_v50 = vld [vmem:[%s2937_s3 + $0x48] sm:$0xff]  ;;  %v875_v52 = vld [vmem:[#allocation10 + $0x38] sm:$0xff] }
  0xa0   : > { %1946 = vmatprep.subr.mxu0 %v538_v8  ;;  %2178 = vmatprep.subr.mxu1 %v538_v8  ;;  %v507_v48 = vld [vmem:[%s2937_s3 + $0x40] sm:$0xff]  ;;  %v524_v51 = vld [vmem:[%s2937_s3 + $0xc8] sm:$0xff]  ;;  %v1180_v53 = vld [vmem:[#allocation11 + $0x38] sm:$0xff] }
  0xa1   : > { %1947 = vmatpush3.msra.mxu0 %v538_v8  ;;  %2194 = vmatpush3.msra.mxu1 %v538_v8  ;;  %v523_v49 = vld [vmem:[%s2937_s3 + $0xc0] sm:$0xff]  ;;  %v874_v54 = vld [vmem:[#allocation10 + $0x30] sm:$0xff]  ;;  %v510_v58 = vld [vmem:[%s2937_s3 + $0x58] sm:$0xff] }
  0xa2   : > { %1948 = vmatprep.subr.mxu0 %v537_v9  ;;  %2179 = vmatprep.subr.mxu1 %v537_v9  ;;  %v1179_v55 = vld [vmem:[#allocation11 + $0x30] sm:$0xff]  ;;  %v526_v59 = vld [vmem:[%s2937_s3 + $0xd8] sm:$0xff]  ;;  %v873_v60 = vld [vmem:[#allocation10 + $0x28] sm:$0xff] }
  0xa3   : > { %1949 = vmatpush3.msra.mxu0 %v537_v9  ;;  %2195 = vmatpush3.msra.mxu1 %v537_v9  ;;  %v509_v56 = vld [vmem:[%s2937_s3 + $0x50] sm:$0xff]  ;;  %v1178_v61 = vld [vmem:[#allocation11 + $0x28] sm:$0xff]  ;;  %v872_v62 = vld [vmem:[#allocation10 + $0x20] sm:$0xff] }
  0xa4   : > { %1950 = vmatprep.subr.mxu0 %v536_v10  ;;  %2180 = vmatprep.subr.mxu1 %v536_v10  ;;  %v525_v57 = vld [vmem:[%s2937_s3 + $0xd0] sm:$0xff]  ;;  %v1177_v63 = vld [vmem:[#allocation11 + $0x20] sm:$0xff]  ;;  %v512_v2 = vld [vmem:[%s2937_s3 + $0x68] sm:$0xff] }
  0xa5   : > { %1951 = vmatpush3.msra.mxu0 %v536_v10  ;;  %2196 = vmatpush3.msra.mxu1 %v536_v10  ;;  %v511_v0 = vld [vmem:[%s2937_s3 + $0x60] sm:$0xff]  ;;  %v528_v3 = vld [vmem:[%s2937_s3 + $0xe8] sm:$0xff]  ;;  %v871_v4 = vld [vmem:[#allocation10 + $0x18] sm:$0xff] }
  0xa6   : > { %1952 = vmatprep.subr.mxu0 %v535_v11  ;;  %2181 = vmatprep.subr.mxu1 %v535_v11  ;;  %v527_v1 = vld [vmem:[%s2937_s3 + $0xe0] sm:$0xff]  ;;  %v1176_v5 = vld [vmem:[#allocation11 + $0x18] sm:$0xff]  ;;  %v870_v6 = vld [vmem:[#allocation10 + $0x10] sm:$0xff] }
  0xa7   : > { %1953 = vmatpush3.msra.mxu0 %v535_v11  ;;  %2197 = vmatpush3.msra.mxu1 %v535_v11  ;;  %v1175_v7 = vld [vmem:[#allocation11 + $0x10] sm:$0xff]  ;;  %v514_v10 = vld [vmem:[%s2937_s3 + $0x78] sm:$0xff] }
  0xa8   : > { %1954 = vmatprep.subr.mxu0 %v534_v12  ;;  %2182 = vmatprep.subr.mxu1 %v534_v12  ;;  %v513_v8 = vld [vmem:[%s2937_s3 + $0x70] sm:$0xff]  ;;  %v530_v11 = vld [vmem:[%s2937_s3 + $0xf8] sm:$0xff] }
  0xa9   : > { %1955 = vmatpush3.msra.mxu0 %v534_v12  ;;  %2198 = vmatpush3.msra.mxu1 %v534_v12  ;;  %v529_v9 = vld [vmem:[%s2937_s3 + $0xf0] sm:$0xff]  ;;  %v869_v12 = vld [vmem:[#allocation10 + $0x8] sm:$0xff]  ;;  %s2501_s3 = sshll.u32 %s2671_s27, 4  ;;  %s2502_s3 = int_to_ptr.vmem [resolvable:$false] %s2501_s3 }
  0xaa   : > { %1956 = vmatprep.subr.mxu0 %v533_v13  ;;  %2183 = vmatprep.subr.mxu1 %v533_v13  ;;  %s2503_s20 = scalar_lea.vmem %s2502_s3, 8192  ;;  %p2504_p9 = scmp.lt.s32.totalorder %s3104_s4, %s2502_s3 }
  0xab   : > { %1957 = vmatpush3.msra.mxu0 %v533_v13  ;;  %2199 = vmatpush3.msra.mxu1 %v533_v13  ;;  %v1174_v13 = vld [vmem:[#allocation11 + $0x8] sm:$0xff]  ;;  %p2505_p13 = scmp.lt.s32.totalorder %s2503_s20, %s2497_s24 }
  0xac   : > { %1958 = vmatprep.subr.mxu0 %v532_v14  ;;  %2184 = vmatprep.subr.mxu1 %v532_v14 }
  0xad   : > { %1959 = vmatpush3.msra.mxu0 %v532_v14  ;;  %2200 = vmatpush3.msra.mxu1 %v532_v14  ;;  %v868_v14 = vld [vmem:[#allocation10] sm:$0xff]  ;;  %p2506_p3 = por %p2505_p13, %p2504_p9 }
  0xae   : > { %1960 = vmatprep.subr.mxu0 %v531_v15  ;;  %2185 = vmatprep.subr.mxu1 %v531_v15 }
  0xaf   : > { %1961 = vmatpush3.msra.mxu0 %v531_v15  ;;  %2201 = vmatpush3.msra.mxu1 %v531_v15  ;;  %v1173_v15 = vld [vmem:[#allocation11] sm:$0xff]  ;;  %p2507_p1 = pnand %p2506_p3, %p2500_p11 }
  0xb0   : > { %1962 = vmatprep.mubr.f32.mxu0 %v499_v16  ;;  %1986 = vmatprep.mubr.f32.mxu1 %v515_v17  ;;  %v836_v16 = vld [vmem:[%s2947_s21] sm:$0xff] }
  0xb1   : > { %1963 = vmatmul.mubr.f32.vlgmr.msra.gmra.mxu0 %v500_v18  ;;  %1987 = vmatmul.mubr.f32.vlgmr.msra.gmra.mxu1 %v516_v19  ;;  %v1141_v17 = vld [vmem:[%s2954_s6] sm:$0xff]  ;;  %v837_v18 = vld [vmem:[%s2947_s21 + $0x8] sm:$0xff] }
  0xb2   : > { %2010 = vmatprep.subr.mxu1 %v883_v20  ;;  %2090 = vmatprep.subr.mxu0 %v1188_v21  ;;  %v1142_v19 = vld [vmem:[%s2954_s6 + $0x8] sm:$0xff] }
  0xb3   : > { %2011 = vmatpush3.msra.mxu1 %v883_v20  ;;  %2091 = vmatpush3.msra.mxu0 %v1188_v21  ;;  %v838_v20 = vld [vmem:[%s2947_s21 + $0x10] sm:$0xff] }
  0xb4   : > { %2012 = vmatprep.subr.mxu1 %v882_v22  ;;  %2092 = vmatprep.subr.mxu0 %v1187_v23  ;;  %v1143_v21 = vld [vmem:[%s2954_s6 + $0x10] sm:$0xff] }
  0xb5   : > { %1965 = vmatprep.mubr.f32.mxu0 %v501_v24  ;;  %1989 = vmatprep.mubr.f32.mxu1 %v517_v25  ;;  %v840_v24 = vld [vmem:[%s2947_s21 + $0x20] sm:$0xff] }
  0xb6   : > { %2013 = vmatpush3.msra.mxu1 %v882_v22  ;;  %2093 = vmatpush3.msra.mxu0 %v1187_v23  ;;  %v839_v22 = vld [vmem:[%s2947_s21 + $0x18] sm:$0xff]  ;;  %v1145_v25 = vld [vmem:[%s2954_s6 + $0x20] sm:$0xff] }
  0xb7   : > { %1966 = vmatmul.mubr.f32.gmra.mxu0 %v502_v26  ;;  %1990 = vmatmul.mubr.f32.gmra.mxu1 %v518_v27  ;;  %v1144_v23 = vld [vmem:[%s2954_s6 + $0x18] sm:$0xff]  ;;  %v841_v26 = vld [vmem:[%s2947_s21 + $0x28] sm:$0xff] }
  0xb8   : > { %2014 = vmatprep.subr.mxu1 %v881_v28  ;;  %2094 = vmatprep.subr.mxu0 %v1186_v29  ;;  %v1146_v27 = vld [vmem:[%s2954_s6 + $0x28] sm:$0xff] }
  0xb9   : > { %2015 = vmatpush3.msra.mxu1 %v881_v28  ;;  %2095 = vmatpush3.msra.mxu0 %v1186_v29  ;;  %v842_v28 = vld [vmem:[%s2947_s21 + $0x30] sm:$0xff] }
  0xba   : > { %2016 = vmatprep.subr.mxu1 %v880_v30  ;;  %2096 = vmatprep.subr.mxu0 %v1185_v31  ;;  %v1147_v29 = vld [vmem:[%s2954_s6 + $0x30] sm:$0xff] }
  0xbb   : > { %1968 = vmatprep.mubr.f32.mxu0 %v503_v32  ;;  %1992 = vmatprep.mubr.f32.mxu1 %v519_v33  ;;  %v844_v32 = vld [vmem:[%s2947_s21 + $0x40] sm:$0xff] }
  0xbc   : > { %2017 = vmatpush3.msra.mxu1 %v880_v30  ;;  %2097 = vmatpush3.msra.mxu0 %v1185_v31  ;;  %v843_v30 = vld [vmem:[%s2947_s21 + $0x38] sm:$0xff]  ;;  %v1149_v33 = vld [vmem:[%s2954_s6 + $0x40] sm:$0xff] }
  0xbd   : > { %1969 = vmatmul.mubr.f32.gmra.mxu0 %v504_v34  ;;  %1993 = vmatmul.mubr.f32.gmra.mxu1 %v520_v35  ;;  %v1148_v31 = vld [vmem:[%s2954_s6 + $0x38] sm:$0xff]  ;;  %v845_v34 = vld [vmem:[%s2947_s21 + $0x48] sm:$0xff] }
  0xbe   : > { %2018 = vmatprep.subr.mxu1 %v879_v36  ;;  %2098 = vmatprep.subr.mxu0 %v1184_v37  ;;  %v1150_v35 = vld [vmem:[%s2954_s6 + $0x48] sm:$0xff] }
  0xbf   : > { %2019 = vmatpush3.msra.mxu1 %v879_v36  ;;  %2099 = vmatpush3.msra.mxu0 %v1184_v37  ;;  %v846_v36 = vld [vmem:[%s2947_s21 + $0x50] sm:$0xff] }
  0xc0   : > { %2020 = vmatprep.subr.mxu1 %v878_v38  ;;  %2100 = vmatprep.subr.mxu0 %v1183_v39  ;;  %v1151_v37 = vld [vmem:[%s2954_s6 + $0x50] sm:$0xff] }
  0xc1   : > { %1971 = vmatprep.mubr.f32.mxu0 %v505_v40  ;;  %1995 = vmatprep.mubr.f32.mxu1 %v521_v41  ;;  %v848_v40 = vld [vmem:[%s2947_s21 + $0x60] sm:$0xff] }
  0xc2   : > { %2021 = vmatpush3.msra.mxu1 %v878_v38  ;;  %2101 = vmatpush3.msra.mxu0 %v1183_v39  ;;  %v847_v38 = vld [vmem:[%s2947_s21 + $0x58] sm:$0xff]  ;;  %v1153_v41 = vld [vmem:[%s2954_s6 + $0x60] sm:$0xff] }
  0xc3   : > { %1972 = vmatmul.mubr.f32.gmra.mxu0 %v506_v42  ;;  %1996 = vmatmul.mubr.f32.gmra.mxu1 %v522_v43  ;;  %v1152_v39 = vld [vmem:[%s2954_s6 + $0x58] sm:$0xff]  ;;  %v849_v42 = vld [vmem:[%s2947_s21 + $0x68] sm:$0xff] }
  0xc4   : > { %2022 = vmatprep.subr.mxu1 %v877_v44  ;;  %2102 = vmatprep.subr.mxu0 %v1182_v45  ;;  %v1154_v43 = vld [vmem:[%s2954_s6 + $0x68] sm:$0xff] }
  0xc5   : > { %2023 = vmatpush3.msra.mxu1 %v877_v44  ;;  %2103 = vmatpush3.msra.mxu0 %v1182_v45  ;;  %v850_v44 = vld [vmem:[%s2947_s21 + $0x70] sm:$0xff] }
  0xc6   : > { %2024 = vmatprep.subr.mxu1 %v876_v46  ;;  %2104 = vmatprep.subr.mxu0 %v1181_v47  ;;  %v1155_v45 = vld [vmem:[%s2954_s6 + $0x70] sm:$0xff] }
  0xc7   : > { %1974 = vmatprep.mubr.f32.mxu0 %v507_v48  ;;  %1998 = vmatprep.mubr.f32.mxu1 %v523_v49  ;;  %v852_v48 = vld [vmem:[%s2947_s21 + $0x80] sm:$0xff] }
  0xc8   : > { %2025 = vmatpush3.msra.mxu1 %v876_v46  ;;  %2105 = vmatpush3.msra.mxu0 %v1181_v47  ;;  %v851_v46 = vld [vmem:[%s2947_s21 + $0x78] sm:$0xff]  ;;  %v1157_v49 = vld [vmem:[%s2954_s6 + $0x80] sm:$0xff] }
  0xc9   : > { %1975 = vmatmul.mubr.f32.gmra.mxu0 %v508_v50  ;;  %1999 = vmatmul.mubr.f32.gmra.mxu1 %v524_v51  ;;  %v1156_v47 = vld [vmem:[%s2954_s6 + $0x78] sm:$0xff]  ;;  %v853_v50 = vld [vmem:[%s2947_s21 + $0x88] sm:$0xff] }
  0xca   : > { %2026 = vmatprep.subr.mxu1 %v875_v52  ;;  %2106 = vmatprep.subr.mxu0 %v1180_v53  ;;  %v1158_v51 = vld [vmem:[%s2954_s6 + $0x88] sm:$0xff] }
  0xcb   : > { %2027 = vmatpush3.msra.mxu1 %v875_v52  ;;  %2107 = vmatpush3.msra.mxu0 %v1180_v53  ;;  %v854_v52 = vld [vmem:[%s2947_s21 + $0x90] sm:$0xff] }
  0xcc   : > { %2028 = vmatprep.subr.mxu1 %v874_v54  ;;  %2108 = vmatprep.subr.mxu0 %v1179_v55  ;;  %v1159_v53 = vld [vmem:[%s2954_s6 + $0x90] sm:$0xff] }
  0xcd   : > { %1977 = vmatprep.mubr.f32.mxu0 %v509_v56  ;;  %2001 = vmatprep.mubr.f32.mxu1 %v525_v57  ;;  %v856_v56 = vld [vmem:[%s2947_s21 + $0xa0] sm:$0xff] }
  0xce   : > { %2029 = vmatpush3.msra.mxu1 %v874_v54  ;;  %2109 = vmatpush3.msra.mxu0 %v1179_v55  ;;  %v855_v54 = vld [vmem:[%s2947_s21 + $0x98] sm:$0xff]  ;;  %v1161_v57 = vld [vmem:[%s2954_s6 + $0xa0] sm:$0xff] }
  0xcf   : > { %1978 = vmatmul.mubr.f32.gmra.mxu0 %v510_v58  ;;  %2002 = vmatmul.mubr.f32.gmra.mxu1 %v526_v59  ;;  %v1160_v55 = vld [vmem:[%s2954_s6 + $0x98] sm:$0xff]  ;;  %v857_v58 = vld [vmem:[%s2947_s21 + $0xa8] sm:$0xff] }
  0xd0   : > { %2030 = vmatprep.subr.mxu1 %v873_v60  ;;  %2110 = vmatprep.subr.mxu0 %v1178_v61  ;;  %v1162_v59 = vld [vmem:[%s2954_s6 + $0xa8] sm:$0xff] }
  0xd1   : > { %2031 = vmatpush3.msra.mxu1 %v873_v60  ;;  %2111 = vmatpush3.msra.mxu0 %v1178_v61  ;;  %v858_v60 = vld [vmem:[%s2947_s21 + $0xb0] sm:$0xff] }
  0xd2   : > { %2032 = vmatprep.subr.mxu1 %v872_v62  ;;  %2112 = vmatprep.subr.mxu0 %v1177_v63  ;;  %v1163_v61 = vld [vmem:[%s2954_s6 + $0xb0] sm:$0xff] }
  0xd3   : > { %1980 = vmatprep.mubr.f32.mxu0 %v511_v0  ;;  %2004 = vmatprep.mubr.f32.mxu1 %v527_v1  ;;  %v860_v0 = vld [vmem:[%s2947_s21 + $0xc0] sm:$0xff] }
  0xd4   : > { %2033 = vmatpush3.msra.mxu1 %v872_v62  ;;  %2113 = vmatpush3.msra.mxu0 %v1177_v63  ;;  %v859_v62 = vld [vmem:[%s2947_s21 + $0xb8] sm:$0xff]  ;;  %v1165_v1 = vld [vmem:[%s2954_s6 + $0xc0] sm:$0xff] }
  0xd5   : > { %1981 = vmatmul.mubr.f32.gmra.mxu0 %v512_v2  ;;  %2005 = vmatmul.mubr.f32.gmra.mxu1 %v528_v3  ;;  %v1164_v63 = vld [vmem:[%s2954_s6 + $0xb8] sm:$0xff]  ;;  %v861_v2 = vld [vmem:[%s2947_s21 + $0xc8] sm:$0xff] }
  0xd6   : > { %2034 = vmatprep.subr.mxu1 %v871_v4  ;;  %2114 = vmatprep.subr.mxu0 %v1176_v5  ;;  %v1166_v3 = vld [vmem:[%s2954_s6 + $0xc8] sm:$0xff] }
  0xd7   : > { %2035 = vmatpush3.msra.mxu1 %v871_v4  ;;  %2115 = vmatpush3.msra.mxu0 %v1176_v5  ;;  %v862_v4 = vld [vmem:[%s2947_s21 + $0xd0] sm:$0xff] }
  0xd8   : > { %2036 = vmatprep.subr.mxu1 %v870_v6  ;;  %2116 = vmatprep.subr.mxu0 %v1175_v7  ;;  %v1167_v5 = vld [vmem:[%s2954_s6 + $0xd0] sm:$0xff] }
  0xd9   : > { %1983 = vmatprep.mubr.f32.mxu0 %v513_v8  ;;  %2007 = vmatprep.mubr.f32.mxu1 %v529_v9  ;;  %v864_v8 = vld [vmem:[%s2947_s21 + $0xe0] sm:$0xff] }
  0xda   : > { %2037 = vmatpush3.msra.mxu1 %v870_v6  ;;  %2117 = vmatpush3.msra.mxu0 %v1175_v7  ;;  %v863_v6 = vld [vmem:[%s2947_s21 + $0xd8] sm:$0xff]  ;;  %v1169_v9 = vld [vmem:[%s2954_s6 + $0xe0] sm:$0xff] }
  0xdb   : > { %1984 = vmatmul.mubr.f32.gmra.mxu0 %v514_v10  ;;  %2008 = vmatmul.mubr.f32.gmra.mxu1 %v530_v11  ;;  %v1168_v7 = vld [vmem:[%s2954_s6 + $0xd8] sm:$0xff]  ;;  %v865_v10 = vld [vmem:[%s2947_s21 + $0xe8] sm:$0xff] }
  0xdc   : > { %2038 = vmatprep.subr.mxu1 %v869_v12  ;;  %2118 = vmatprep.subr.mxu0 %v1174_v13  ;;  %v1170_v11 = vld [vmem:[%s2954_s6 + $0xe8] sm:$0xff] }
  0xdd   : > { %2039 = vmatpush3.msra.mxu1 %v869_v12  ;;  %2119 = vmatpush3.msra.mxu0 %v1174_v13  ;;  %v866_v12 = vld [vmem:[%s2947_s21 + $0xf0] sm:$0xff] }
  0xde   : > { %2040 = vmatprep.subr.mxu1 %v868_v14  ;;  %2120 = vmatprep.subr.mxu0 %v1173_v15  ;;  %v1171_v13 = vld [vmem:[%s2954_s6 + $0xf0] sm:$0xff] }
  0xdf   : > { %2041 = vmatpush3.msra.mxu1 %v868_v14  ;;  %2042 = vmatprep.mubr.f32.mxu1 %v836_v16  ;;  %v867_v14 = vld [vmem:[%s2947_s21 + $0xf8] sm:$0xff] }
  0xe0   : > { %2121 = vmatpush3.msra.mxu0 %v1173_v15  ;;  %2122 = vmatprep.mubr.f32.mxu0 %v1141_v17  ;;  %v1172_v15 = vld [vmem:[%s2954_s6 + $0xf8] sm:$0xff] }
  0xe1   : > { %2043 = vmatmul.mubr.f32.vlgmr.msra.gmra.mxu1 %v837_v18  ;;  %2123 = vmatmul.mubr.f32.vlgmr.msra.gmra.mxu0 %v1142_v19 }
  0xe2   : > { %2045 = vmatprep.mubr.f32.mxu1 %v838_v20  ;;  %2125 = vmatprep.mubr.f32.mxu0 %v1143_v21 }
  0xe5   : > { %2046 = vmatmul.mubr.f32.gmra.mxu1 %v839_v22  ;;  %2126 = vmatmul.mubr.f32.gmra.mxu0 %v1144_v23 }
  0xe6   : > { %2048 = vmatprep.mubr.f32.mxu1 %v840_v24  ;;  %2128 = vmatprep.mubr.f32.mxu0 %v1145_v25 }
  0xe9   : > { %2049 = vmatmul.mubr.f32.gmra.mxu1 %v841_v26  ;;  %2129 = vmatmul.mubr.f32.gmra.mxu0 %v1146_v27 }
  0xea   : > { %2051 = vmatprep.mubr.f32.mxu1 %v842_v28  ;;  %2131 = vmatprep.mubr.f32.mxu0 %v1147_v29 }
  0xed   : > { %2052 = vmatmul.mubr.f32.gmra.mxu1 %v843_v30  ;;  %2132 = vmatmul.mubr.f32.gmra.mxu0 %v1148_v31 }
  0xee   : > { %2054 = vmatprep.mubr.f32.mxu1 %v844_v32  ;;  %2134 = vmatprep.mubr.f32.mxu0 %v1149_v33 }
  0xf1   : > { %2055 = vmatmul.mubr.f32.gmra.mxu1 %v845_v34  ;;  %2135 = vmatmul.mubr.f32.gmra.mxu0 %v1150_v35 }
  0xf2   : > { %2057 = vmatprep.mubr.f32.mxu1 %v846_v36  ;;  %2137 = vmatprep.mubr.f32.mxu0 %v1151_v37 }
  0xf5   : > { %2058 = vmatmul.mubr.f32.gmra.mxu1 %v847_v38  ;;  %2138 = vmatmul.mubr.f32.gmra.mxu0 %v1152_v39 }
  0xf6   : > { %2060 = vmatprep.mubr.f32.mxu1 %v848_v40  ;;  %2140 = vmatprep.mubr.f32.mxu0 %v1153_v41 }
  0xf9   : > { %2061 = vmatmul.mubr.f32.gmra.mxu1 %v849_v42  ;;  %2141 = vmatmul.mubr.f32.gmra.mxu0 %v1154_v43 }
  0xfa   : > { %2063 = vmatprep.mubr.f32.mxu1 %v850_v44  ;;  %2143 = vmatprep.mubr.f32.mxu0 %v1155_v45 }
  0xfd   : > { %2064 = vmatmul.mubr.f32.gmra.mxu1 %v851_v46  ;;  %2144 = vmatmul.mubr.f32.gmra.mxu0 %v1156_v47 }
  0xfe   : > { %2066 = vmatprep.mubr.f32.mxu1 %v852_v48  ;;  %2146 = vmatprep.mubr.f32.mxu0 %v1157_v49 }
 0x101   : > { %2067 = vmatmul.mubr.f32.gmra.mxu1 %v853_v50  ;;  %2147 = vmatmul.mubr.f32.gmra.mxu0 %v1158_v51 }
 0x102   : > { %2069 = vmatprep.mubr.f32.mxu1 %v854_v52  ;;  %2149 = vmatprep.mubr.f32.mxu0 %v1159_v53 }
 0x105   : > { %2070 = vmatmul.mubr.f32.gmra.mxu1 %v855_v54  ;;  %2150 = vmatmul.mubr.f32.gmra.mxu0 %v1160_v55 }
 0x106   : > { %2072 = vmatprep.mubr.f32.mxu1 %v856_v56  ;;  %2152 = vmatprep.mubr.f32.mxu0 %v1161_v57 }
 0x109   : > { %2073 = vmatmul.mubr.f32.gmra.mxu1 %v857_v58  ;;  %2153 = vmatmul.mubr.f32.gmra.mxu0 %v1162_v59 }
 0x10a   : > { %2075 = vmatprep.mubr.f32.mxu1 %v858_v60  ;;  %2155 = vmatprep.mubr.f32.mxu0 %v1163_v61 }
 0x10d   : > { %2076 = vmatmul.mubr.f32.gmra.mxu1 %v859_v62  ;;  %2156 = vmatmul.mubr.f32.gmra.mxu0 %v1164_v63 }
 0x10e   : > { %2078 = vmatprep.mubr.f32.mxu1 %v860_v0  ;;  %2158 = vmatprep.mubr.f32.mxu0 %v1165_v1 }
 0x111   : > { %2079 = vmatmul.mubr.f32.gmra.mxu1 %v861_v2  ;;  %2159 = vmatmul.mubr.f32.gmra.mxu0 %v1166_v3 }
 0x112   : > { %2081 = vmatprep.mubr.f32.mxu1 %v862_v4  ;;  %2161 = vmatprep.mubr.f32.mxu0 %v1167_v5 }
 0x115   : > { %2082 = vmatmul.mubr.f32.gmra.mxu1 %v863_v6  ;;  %2162 = vmatmul.mubr.f32.gmra.mxu0 %v1168_v7 }
 0x116   : > { %2084 = vmatprep.mubr.f32.mxu1 %v864_v8  ;;  %2164 = vmatprep.mubr.f32.mxu0 %v1169_v9 }
 0x119   : > { %2085 = vmatmul.mubr.f32.gmra.mxu1 %v865_v10  ;;  %2165 = vmatmul.mubr.f32.gmra.mxu0 %v1170_v11 }
 0x11a   : > { %2087 = vmatprep.mubr.f32.mxu1 %v866_v12  ;;  %2167 = vmatprep.mubr.f32.mxu0 %v1171_v13 }
 0x11d   : > { %2088 = vmatmul.mubr.f32.gmra.mxu1 %v867_v14  ;;  %2168 = vmatmul.mubr.f32.gmra.mxu0 %v1172_v15 }
 0x171   : > { %v1964_v16 = vpop.f32.mrf.mxu0  ;;  %v1988_v17 = vpop.f32.mrf.mxu1 }
 0x172   : > { %v773_v18 = vmul.f32 0.17677669, %v1964_v16  ;;  %v789_v19 = vmul.f32 0.17677669, %v1988_v17 }
 0x173   : > { %v613_v20 = vpop.f32.mrf.mxu0  ;;  %v693_v21 = vpop.f32.mrf.mxu1 }
 0x174   : > { %805 = vst [vmem:[%s3061_s17 + $0x8] sm:$0xff] %v773_v18  ;;  %821 = vst [vmem:[%s3061_s17 + $0x88] sm:$0xff] %v789_v19  ;;  %v772_v22 = vmul.f32 0.17677669, %v613_v20  ;;  %v788_v23 = vmul.f32 0.17677669, %v693_v21 }
 0x176   : > { %804 = vst [vmem:[%s3061_s17] sm:$0xff] %v772_v22  ;;  %820 = vst [vmem:[%s3061_s17 + $0x80] sm:$0xff] %v788_v23 }
 0x177   : > { %v1967_v24 = vpop.f32.mrf.mxu0  ;;  %v1991_v25 = vpop.f32.mrf.mxu1 }
 0x178   : > { %v775_v26 = vmul.f32 0.17677669, %v1967_v24  ;;  %v791_v27 = vmul.f32 0.17677669, %v1991_v25 }
 0x179   : > { %v623_v28 = vpop.f32.mrf.mxu0  ;;  %v703_v29 = vpop.f32.mrf.mxu1 }
 0x17a   : > { %807 = vst [vmem:[%s3061_s17 + $0x18] sm:$0xff] %v775_v26  ;;  %823 = vst [vmem:[%s3061_s17 + $0x98] sm:$0xff] %v791_v27  ;;  %v774_v30 = vmul.f32 0.17677669, %v623_v28  ;;  %v790_v31 = vmul.f32 0.17677669, %v703_v29 }
 0x17c   : > { %806 = vst [vmem:[%s3061_s17 + $0x10] sm:$0xff] %v774_v30  ;;  %822 = vst [vmem:[%s3061_s17 + $0x90] sm:$0xff] %v790_v31 }
 0x17d   : > { %v1970_v32 = vpop.f32.mrf.mxu0  ;;  %v1994_v33 = vpop.f32.mrf.mxu1 }
 0x17e   : > { %v777_v34 = vmul.f32 0.17677669, %v1970_v32  ;;  %v793_v35 = vmul.f32 0.17677669, %v1994_v33 }
 0x17f   : > { %v633_v36 = vpop.f32.mrf.mxu0  ;;  %v713_v37 = vpop.f32.mrf.mxu1 }
 0x180   : > { %809 = vst [vmem:[%s3061_s17 + $0x28] sm:$0xff] %v777_v34  ;;  %825 = vst [vmem:[%s3061_s17 + $0xa8] sm:$0xff] %v793_v35  ;;  %v776_v38 = vmul.f32 0.17677669, %v633_v36  ;;  %v792_v39 = vmul.f32 0.17677669, %v713_v37 }
 0x182   : > { %808 = vst [vmem:[%s3061_s17 + $0x20] sm:$0xff] %v776_v38  ;;  %824 = vst [vmem:[%s3061_s17 + $0xa0] sm:$0xff] %v792_v39 }
 0x183   : > { %v1973_v40 = vpop.f32.mrf.mxu0  ;;  %v1997_v41 = vpop.f32.mrf.mxu1 }
 0x184   : > { %v779_v42 = vmul.f32 0.17677669, %v1973_v40  ;;  %v795_v43 = vmul.f32 0.17677669, %v1997_v41 }
 0x185   : > { %v643_v44 = vpop.f32.mrf.mxu0  ;;  %v723_v45 = vpop.f32.mrf.mxu1 }
 0x186   : > { %811 = vst [vmem:[%s3061_s17 + $0x38] sm:$0xff] %v779_v42  ;;  %827 = vst [vmem:[%s3061_s17 + $0xb8] sm:$0xff] %v795_v43  ;;  %v778_v46 = vmul.f32 0.17677669, %v643_v44  ;;  %v794_v47 = vmul.f32 0.17677669, %v723_v45 }
 0x188   : > { %810 = vst [vmem:[%s3061_s17 + $0x30] sm:$0xff] %v778_v46  ;;  %826 = vst [vmem:[%s3061_s17 + $0xb0] sm:$0xff] %v794_v47 }
 0x189   : > { %v1976_v48 = vpop.f32.mrf.mxu0  ;;  %v2000_v49 = vpop.f32.mrf.mxu1 }
 0x18a   : > { %v781_v50 = vmul.f32 0.17677669, %v1976_v48  ;;  %v797_v51 = vmul.f32 0.17677669, %v2000_v49 }
 0x18b   : > { %v653_v52 = vpop.f32.mrf.mxu0  ;;  %v733_v53 = vpop.f32.mrf.mxu1 }
 0x18c   : > { %813 = vst [vmem:[%s3061_s17 + $0x48] sm:$0xff] %v781_v50  ;;  %829 = vst [vmem:[%s3061_s17 + $0xc8] sm:$0xff] %v797_v51  ;;  %v780_v54 = vmul.f32 0.17677669, %v653_v52  ;;  %v796_v55 = vmul.f32 0.17677669, %v733_v53 }
 0x18e   : > { %812 = vst [vmem:[%s3061_s17 + $0x40] sm:$0xff] %v780_v54  ;;  %828 = vst [vmem:[%s3061_s17 + $0xc0] sm:$0xff] %v796_v55 }
 0x18f   : > { %v1979_v56 = vpop.f32.mrf.mxu0  ;;  %v2003_v57 = vpop.f32.mrf.mxu1 }
 0x190   : > { %v783_v58 = vmul.f32 0.17677669, %v1979_v56  ;;  %v799_v59 = vmul.f32 0.17677669, %v2003_v57 }
 0x191   : > { %v663_v60 = vpop.f32.mrf.mxu0  ;;  %v743_v61 = vpop.f32.mrf.mxu1 }
 0x192   : > { %815 = vst [vmem:[%s3061_s17 + $0x58] sm:$0xff] %v783_v58  ;;  %831 = vst [vmem:[%s3061_s17 + $0xd8] sm:$0xff] %v799_v59  ;;  %v782_v62 = vmul.f32 0.17677669, %v663_v60  ;;  %v798_v63 = vmul.f32 0.17677669, %v743_v61 }
 0x194   : > { %814 = vst [vmem:[%s3061_s17 + $0x50] sm:$0xff] %v782_v62  ;;  %830 = vst [vmem:[%s3061_s17 + $0xd0] sm:$0xff] %v798_v63 }
 0x195   : > { %v1982_v0 = vpop.f32.mrf.mxu0  ;;  %v2006_v1 = vpop.f32.mrf.mxu1 }
 0x196   : > { %v785_v2 = vmul.f32 0.17677669, %v1982_v0  ;;  %v801_v3 = vmul.f32 0.17677669, %v2006_v1 }
 0x197   : > { %v673_v4 = vpop.f32.mrf.mxu0  ;;  %v753_v5 = vpop.f32.mrf.mxu1 }
 0x198   : > { %817 = vst [vmem:[%s3061_s17 + $0x68] sm:$0xff] %v785_v2  ;;  %833 = vst [vmem:[%s3061_s17 + $0xe8] sm:$0xff] %v801_v3  ;;  %v784_v6 = vmul.f32 0.17677669, %v673_v4  ;;  %v800_v7 = vmul.f32 0.17677669, %v753_v5 }
 0x19a   : > { %816 = vst [vmem:[%s3061_s17 + $0x60] sm:$0xff] %v784_v6  ;;  %832 = vst [vmem:[%s3061_s17 + $0xe0] sm:$0xff] %v800_v7 }
 0x19b   : > { %v1985_v8 = vpop.f32.mrf.mxu0  ;;  %v2009_v9 = vpop.f32.mrf.mxu1 }
 0x19c   : > { %v787_v10 = vmul.f32 0.17677669, %v1985_v8  ;;  %v803_v11 = vmul.f32 0.17677669, %v2009_v9 }
 0x19d   : > { %v683_v12 = vpop.f32.mrf.mxu0  ;;  %v763_v13 = vpop.f32.mrf.mxu1 }
 0x19e   : > { %819 = vst [vmem:[%s3061_s17 + $0x78] sm:$0xff] %v787_v10  ;;  %835 = vst [vmem:[%s3061_s17 + $0xf8] sm:$0xff] %v803_v11  ;;  %v786_v14 = vmul.f32 0.17677669, %v683_v12  ;;  %v802_v15 = vmul.f32 0.17677669, %v763_v13 }
 0x1a0   : > { %818 = vst [vmem:[%s3061_s17 + $0x70] sm:$0xff] %v786_v14  ;;  %834 = vst [vmem:[%s3061_s17 + $0xf0] sm:$0xff] %v802_v15 }
 0x1a1   : > { %v2044_v16 = vpop.f32.mrf.mxu1  ;;  %v2124_v17 = vpop.f32.mrf.mxu0 }
 0x1a2   : > { %2510 = shalt.err (!%p2507_p1)
}
 0x1a3   : > { %s2511_s21 = scalar_lea.hbm %s3102_s1, 4096  ;;  %s2515_s14 = scalar_lea.hbm %s3364_s15, 16384 }
 0x1a4   : > { %p2512_p4 = scmp.ne.s32.totalorder %s3102_s1, %s2511_s21  ;;  %p2516_p2 = scmp.lt.s32.totalorder %s3102_s1, %s3364_s15 }
 0x1a5   : > { %p2517_p5 = scmp.lt.s32.totalorder %s2515_s14, %s2511_s21 }
 0x1a6   : > { %p2513_p0 = pnand %p2512_p4, %p3365_p10 }
 0x1a7   : > { %p2518_p6 = por %p2517_p5, %p2516_p2 }
 0x1a8   : > { %p2514_p12 = pneg %p2513_p0 }
 0x1aa   : > { %p2519_p7 = pnand %p2518_p6, %p2514_p12 }
 0x1ac   : > { %2522 = shalt.err (!%p2519_p7)
}
 0x1ad   : > { %s2672_s10 = smov 128   ;;  %s2673_s16 = smov 8   ;;  %v950_v18 = vpop.f32.mrf.mxu1  ;;  %v1255_v19 = vpop.f32.mrf.mxu0 }
 0x1ae   : > { %2220 = dma.vmem_to_hbm [thread:$0]  (%p3365_p10), %s3104_s4, 4096, %s3102_s1, %s1447_s7, %s2672_s10, %s2672_s10, %s2673_s16  }
 0x1af   : > { %s3135_s23 = scalar_lea.vmem [#allocation14], %s2933_s22  ;;  %s3139_s24 = scalar_lea.vmem [#allocation16], %s2933_s22  ;;  %v2047_v20 = vpop.f32.mrf.mxu1  ;;  %v2127_v21 = vpop.f32.mrf.mxu0 }
 0x1b0   : > { %1110 = vst [vmem:[%s3135_s23 + $0x8] sm:$0xff] %v2044_v16  ;;  %1415 = vst [vmem:[%s3139_s24 + $0x8] sm:$0xff] %v2124_v17  ;;  %s1490_s25 = sshll.u32 %s3135_s23, 4  ;;  %s1508_s22 = sshll.u32 %s3139_s24, 4  ;;  %s3210_s25 = int_to_ptr.vmem [resolvable:$true] %s1490_s25  ;;  %s3218_s22 = int_to_ptr.vmem [resolvable:$true] %s1508_s22 }
 0x1b1   : > { %1109 = vst [vmem:[%s3135_s23] sm:$0xff] %v950_v18  ;;  %1414 = vst [vmem:[%s3139_s24] sm:$0xff] %v1255_v19  ;;  %v960_v22 = vpop.f32.mrf.mxu1  ;;  %v1265_v23 = vpop.f32.mrf.mxu0  ;;  %s3366_s7 = sld [smem:[#allocation34_spill]]  ;;  %s3224_s17 = scalar_lea.sflag [#allocation15], %s415_s9 }
 0x1b2   : > { %1112 = vst [vmem:[%s3135_s23 + $0x18] sm:$0xff] %v2047_v20  ;;  %1417 = vst [vmem:[%s3139_s24 + $0x18] sm:$0xff] %v2127_v21  ;;  %s3367_s21 = sld [smem:[#allocation35_spill]]  ;;  %s2523_s14 = scalar_lea.vmem %s3210_s25, 4096 }
 0x1b3   : > { %1111 = vst [vmem:[%s3135_s23 + $0x10] sm:$0xff] %v960_v22  ;;  %1416 = vst [vmem:[%s3139_s24 + $0x10] sm:$0xff] %v1265_v23  ;;  %v2050_v24 = vpop.f32.mrf.mxu1  ;;  %v2130_v25 = vpop.f32.mrf.mxu0  ;;  %p2524_p8 = scmp.ne.s32.totalorder %s3210_s25, %s2523_s14  ;;  %s2674_s26 = smov [#allocation14]  }
 0x1b4   : > { %1114 = vst [vmem:[%s3135_s23 + $0x28] sm:$0xff] %v2050_v24  ;;  %1419 = vst [vmem:[%s3139_s24 + $0x28] sm:$0xff] %v2130_v25  ;;  %s2527_s8 = sshll.u32 %s2674_s26, 4  ;;  %s2528_s8 = int_to_ptr.vmem [resolvable:$false] %s2527_s8 }
 0x1b5   : > { %v970_v26 = vpop.f32.mrf.mxu1  ;;  %v1275_v27 = vpop.f32.mrf.mxu0  ;;  %p2525_p11 = pnand %p2524_p8, %p3365_p10  ;;  %s2529_s4 = scalar_lea.vmem %s2528_s8, 8192 }
 0x1b6   : > { %1113 = vst [vmem:[%s3135_s23 + $0x20] sm:$0xff] %v970_v26  ;;  %1418 = vst [vmem:[%s3139_s24 + $0x20] sm:$0xff] %v1275_v27  ;;  %p2530_p13 = scmp.lt.s32.totalorder %s3210_s25, %s2528_s8  ;;  %p2531_p3 = scmp.lt.s32.totalorder %s2529_s4, %s2523_s14 }
 0x1b7   : > { %v2053_v28 = vpop.f32.mrf.mxu1  ;;  %v2133_v29 = vpop.f32.mrf.mxu0  ;;  %s3208_s27 = scalar_lea.hbm %s3366_s7, %s3093_s30  ;;  %p2526_p9 = pneg %p2525_p11 }
 0x1b8   : > { %1116 = vst [vmem:[%s3135_s23 + $0x38] sm:$0xff] %v2053_v28  ;;  %1421 = vst [vmem:[%s3139_s24 + $0x38] sm:$0xff] %v2133_v29  ;;  %s3216_s6 = scalar_lea.hbm %s3367_s21, %s3093_s30  ;;  %p2532_p1 = por %p2531_p3, %p2530_p13 }
 0x1b9   : > { %v980_v30 = vpop.f32.mrf.mxu1  ;;  %v1285_v31 = vpop.f32.mrf.mxu0 }
 0x1ba   : > { %1115 = vst [vmem:[%s3135_s23 + $0x30] sm:$0xff] %v980_v30  ;;  %1420 = vst [vmem:[%s3139_s24 + $0x30] sm:$0xff] %v1285_v31  ;;  %p2533_p4 = pnand %p2532_p1, %p2526_p9 }
 0x1bb   : > { %v2056_v32 = vpop.f32.mrf.mxu1  ;;  %v2136_v33 = vpop.f32.mrf.mxu0 }
 0x1bc   : > { %1118 = vst [vmem:[%s3135_s23 + $0x48] sm:$0xff] %v2056_v32  ;;  %1423 = vst [vmem:[%s3139_s24 + $0x48] sm:$0xff] %v2136_v33 }
 0x1bd   : > { %v990_v34 = vpop.f32.mrf.mxu1  ;;  %v1295_v35 = vpop.f32.mrf.mxu0 }
 0x1be   : > { %1117 = vst [vmem:[%s3135_s23 + $0x40] sm:$0xff] %v990_v34  ;;  %1422 = vst [vmem:[%s3139_s24 + $0x40] sm:$0xff] %v1295_v35 }
 0x1bf   : > { %v2059_v36 = vpop.f32.mrf.mxu1  ;;  %v2139_v37 = vpop.f32.mrf.mxu0 }
 0x1c0   : > { %1120 = vst [vmem:[%s3135_s23 + $0x58] sm:$0xff] %v2059_v36  ;;  %1425 = vst [vmem:[%s3139_s24 + $0x58] sm:$0xff] %v2139_v37 }
 0x1c1   : > { %v1000_v38 = vpop.f32.mrf.mxu1  ;;  %v1305_v39 = vpop.f32.mrf.mxu0 }
 0x1c2   : > { %1119 = vst [vmem:[%s3135_s23 + $0x50] sm:$0xff] %v1000_v38  ;;  %1424 = vst [vmem:[%s3139_s24 + $0x50] sm:$0xff] %v1305_v39 }
 0x1c3   : > { %v2062_v40 = vpop.f32.mrf.mxu1  ;;  %v2142_v41 = vpop.f32.mrf.mxu0 }
 0x1c4   : > { %1122 = vst [vmem:[%s3135_s23 + $0x68] sm:$0xff] %v2062_v40  ;;  %1427 = vst [vmem:[%s3139_s24 + $0x68] sm:$0xff] %v2142_v41 }
 0x1c5   : > { %v1010_v42 = vpop.f32.mrf.mxu1  ;;  %v1315_v43 = vpop.f32.mrf.mxu0 }
 0x1c6   : > { %1121 = vst [vmem:[%s3135_s23 + $0x60] sm:$0xff] %v1010_v42  ;;  %1426 = vst [vmem:[%s3139_s24 + $0x60] sm:$0xff] %v1315_v43 }
 0x1c7   : > { %v2065_v44 = vpop.f32.mrf.mxu1  ;;  %v2145_v45 = vpop.f32.mrf.mxu0 }
 0x1c8   : > { %1124 = vst [vmem:[%s3135_s23 + $0x78] sm:$0xff] %v2065_v44  ;;  %1429 = vst [vmem:[%s3139_s24 + $0x78] sm:$0xff] %v2145_v45 }
 0x1c9   : > { %v1020_v46 = vpop.f32.mrf.mxu1  ;;  %v1325_v47 = vpop.f32.mrf.mxu0 }
 0x1ca   : > { %1123 = vst [vmem:[%s3135_s23 + $0x70] sm:$0xff] %v1020_v46  ;;  %1428 = vst [vmem:[%s3139_s24 + $0x70] sm:$0xff] %v1325_v47 }
 0x1cb   : > { %v2068_v48 = vpop.f32.mrf.mxu1  ;;  %v2148_v49 = vpop.f32.mrf.mxu0 }
 0x1cc   : > { %1126 = vst [vmem:[%s3135_s23 + $0x88] sm:$0xff] %v2068_v48  ;;  %1431 = vst [vmem:[%s3139_s24 + $0x88] sm:$0xff] %v2148_v49 }
 0x1cd   : > { %v1030_v50 = vpop.f32.mrf.mxu1  ;;  %v1335_v51 = vpop.f32.mrf.mxu0 }
 0x1ce   : > { %1125 = vst [vmem:[%s3135_s23 + $0x80] sm:$0xff] %v1030_v50  ;;  %1430 = vst [vmem:[%s3139_s24 + $0x80] sm:$0xff] %v1335_v51 }
 0x1cf   : > { %v2071_v52 = vpop.f32.mrf.mxu1  ;;  %v2151_v53 = vpop.f32.mrf.mxu0 }
 0x1d0   : > { %1128 = vst [vmem:[%s3135_s23 + $0x98] sm:$0xff] %v2071_v52  ;;  %1433 = vst [vmem:[%s3139_s24 + $0x98] sm:$0xff] %v2151_v53 }
 0x1d1   : > { %v1040_v54 = vpop.f32.mrf.mxu1  ;;  %v1345_v55 = vpop.f32.mrf.mxu0 }
 0x1d2   : > { %1127 = vst [vmem:[%s3135_s23 + $0x90] sm:$0xff] %v1040_v54  ;;  %1432 = vst [vmem:[%s3139_s24 + $0x90] sm:$0xff] %v1345_v55 }
 0x1d3   : > { %v2074_v56 = vpop.f32.mrf.mxu1  ;;  %v2154_v57 = vpop.f32.mrf.mxu0 }
 0x1d4   : > { %1130 = vst [vmem:[%s3135_s23 + $0xa8] sm:$0xff] %v2074_v56  ;;  %1435 = vst [vmem:[%s3139_s24 + $0xa8] sm:$0xff] %v2154_v57 }
 0x1d5   : > { %v1050_v58 = vpop.f32.mrf.mxu1  ;;  %v1355_v59 = vpop.f32.mrf.mxu0 }
 0x1d6   : > { %1129 = vst [vmem:[%s3135_s23 + $0xa0] sm:$0xff] %v1050_v58  ;;  %1434 = vst [vmem:[%s3139_s24 + $0xa0] sm:$0xff] %v1355_v59 }
 0x1d7   : > { %v2077_v60 = vpop.f32.mrf.mxu1  ;;  %v2157_v61 = vpop.f32.mrf.mxu0 }
 0x1d8   : > { %1132 = vst [vmem:[%s3135_s23 + $0xb8] sm:$0xff] %v2077_v60  ;;  %1437 = vst [vmem:[%s3139_s24 + $0xb8] sm:$0xff] %v2157_v61 }
 0x1d9   : > { %v1060_v62 = vpop.f32.mrf.mxu1  ;;  %v1365_v63 = vpop.f32.mrf.mxu0 }
 0x1da   : > { %1131 = vst [vmem:[%s3135_s23 + $0xb0] sm:$0xff] %v1060_v62  ;;  %1436 = vst [vmem:[%s3139_s24 + $0xb0] sm:$0xff] %v1365_v63 }
 0x1db   : > { %v2080_v0 = vpop.f32.mrf.mxu1  ;;  %v2160_v1 = vpop.f32.mrf.mxu0 }
 0x1dc   : > { %1134 = vst [vmem:[%s3135_s23 + $0xc8] sm:$0xff] %v2080_v0  ;;  %1439 = vst [vmem:[%s3139_s24 + $0xc8] sm:$0xff] %v2160_v1 }
 0x1dd   : > { %v1070_v2 = vpop.f32.mrf.mxu1  ;;  %v1375_v3 = vpop.f32.mrf.mxu0 }
 0x1de   : > { %1133 = vst [vmem:[%s3135_s23 + $0xc0] sm:$0xff] %v1070_v2  ;;  %1438 = vst [vmem:[%s3139_s24 + $0xc0] sm:$0xff] %v1375_v3 }
 0x1df   : > { %v2083_v4 = vpop.f32.mrf.mxu1  ;;  %v2163_v5 = vpop.f32.mrf.mxu0 }
 0x1e0   : > { %1136 = vst [vmem:[%s3135_s23 + $0xd8] sm:$0xff] %v2083_v4  ;;  %1441 = vst [vmem:[%s3139_s24 + $0xd8] sm:$0xff] %v2163_v5 }
 0x1e1   : > { %v1080_v6 = vpop.f32.mrf.mxu1  ;;  %v1385_v7 = vpop.f32.mrf.mxu0 }
 0x1e2   : > { %1135 = vst [vmem:[%s3135_s23 + $0xd0] sm:$0xff] %v1080_v6  ;;  %1440 = vst [vmem:[%s3139_s24 + $0xd0] sm:$0xff] %v1385_v7 }
 0x1e3   : > { %v2086_v8 = vpop.f32.mrf.mxu1  ;;  %v2166_v9 = vpop.f32.mrf.mxu0 }
 0x1e4   : > { %1138 = vst [vmem:[%s3135_s23 + $0xe8] sm:$0xff] %v2086_v8  ;;  %1443 = vst [vmem:[%s3139_s24 + $0xe8] sm:$0xff] %v2166_v9 }
 0x1e5   : > { %v1090_v10 = vpop.f32.mrf.mxu1  ;;  %v1395_v11 = vpop.f32.mrf.mxu0 }
 0x1e6   : > { %1137 = vst [vmem:[%s3135_s23 + $0xe0] sm:$0xff] %v1090_v10  ;;  %1442 = vst [vmem:[%s3139_s24 + $0xe0] sm:$0xff] %v1395_v11 }
 0x1e7   : > { %v2089_v12 = vpop.f32.mrf.mxu1  ;;  %v2169_v13 = vpop.f32.mrf.mxu0 }
 0x1e8   : > { %1140 = vst [vmem:[%s3135_s23 + $0xf8] sm:$0xff] %v2089_v12  ;;  %1445 = vst [vmem:[%s3139_s24 + $0xf8] sm:$0xff] %v2169_v13 }
 0x1e9   : > { %v1100_v14 = vpop.f32.mrf.mxu1  ;;  %v1405_v15 = vpop.f32.mrf.mxu0 }
 0x1ea   : > { %1139 = vst [vmem:[%s3135_s23 + $0xf0] sm:$0xff] %v1100_v14  ;;  %1444 = vst [vmem:[%s3139_s24 + $0xf0] sm:$0xff] %v1405_v15 }
 0x1eb   : > { %2536 = shalt.err (!%p2533_p4)
}
 0x1ec   : > { %s2537_s13 = scalar_lea.hbm %s3208_s27, 4096  ;;  %s2541_s23 = scalar_lea.hbm %s3366_s7, 16384 }
 0x1ed   : > { %p2538_p0 = scmp.ne.s32.totalorder %s3208_s27, %s2537_s13  ;;  %p2542_p5 = scmp.lt.s32.totalorder %s3208_s27, %s3366_s7 }
 0x1ee   : > { %p2543_p6 = scmp.lt.s32.totalorder %s2541_s23, %s2537_s13 }
 0x1ef   : > { %p2539_p12 = pnand %p2538_p0, %p3365_p10 }
 0x1f0   : > { %p2544_p7 = por %p2543_p6, %p2542_p5 }
 0x1f1   : > { %p2540_p2 = pneg %p2539_p12 }
 0x1f3   : > { %p2545_p8 = pnand %p2544_p7, %p2540_p2 }
 0x1f5   : > { %2548 = shalt.err (!%p2545_p8)
}
 0x1f6   : > { %2221 = dma.vmem_to_hbm [thread:$0]  (%p3365_p10), %s3210_s25, 4096, %s3208_s27, %s3224_s17, %s2672_s10, %s2672_s10, %s2673_s16  }
 0x1f7   : > { %s2549_s3 = scalar_lea.vmem %s3218_s22, 4096  ;;  %s2675_s20 = smov [#allocation16]  }
 0x1f8   : > { %p2550_p11 = scmp.ne.s32.totalorder %s3218_s22, %s2549_s3  ;;  %s2553_s14 = sshll.u32 %s2675_s20, 4  ;;  %s2554_s14 = int_to_ptr.vmem [resolvable:$false] %s2553_s14 }
 0x1f9   : > { %s2555_s26 = scalar_lea.vmem %s2554_s14, 8192  ;;  %p2556_p3 = scmp.lt.s32.totalorder %s3218_s22, %s2554_s14 }
 0x1fa   : > { %p2551_p9 = pnand %p2550_p11, %p3365_p10  ;;  %p2557_p1 = scmp.lt.s32.totalorder %s2555_s26, %s2549_s3 }
 0x1fc   : > { %p2552_p13 = pneg %p2551_p9  ;;  %p2558_p4 = por %p2557_p1, %p2556_p3 }
 0x1fe   : > { %p2559_p0 = pnand %p2558_p4, %p2552_p13 }
 0x200   : > { %2562 = shalt.err (!%p2559_p0)
}
 0x201   : > { %s2563_s8 = scalar_lea.hbm %s3216_s6, 4096  ;;  %s2567_s4 = scalar_lea.hbm %s3367_s21, 16384 }
 0x202   : > { %p2564_p12 = scmp.ne.s32.totalorder %s3216_s6, %s2563_s8  ;;  %p2568_p6 = scmp.lt.s32.totalorder %s3216_s6, %s3367_s21 }
 0x203   : > { %p2569_p7 = scmp.lt.s32.totalorder %s2567_s4, %s2563_s8 }
 0x204   : > { %p2565_p2 = pnand %p2564_p12, %p3365_p10 }
 0x205   : > { %p2570_p8 = por %p2569_p7, %p2568_p6 }
 0x206   : > { %p2566_p5 = pneg %p2565_p2 }
 0x208   : > { %p2571_p11 = pnand %p2570_p8, %p2566_p5 }
 0x20a   : > { %2574 = shalt.err (!%p2571_p11)
}
 0x20b   : > { %2222 = dma.vmem_to_hbm [thread:$0]  (%p3365_p10), %s3218_s22, 4096, %s3216_s6, %s3224_s17, %s2672_s10, %s2672_s10, %s2673_s16  }
 0x20c PF: > { %s3368_s30 = sld [smem:[#allocation23_spill]]  ;;  %p2263_p9 = scmp.ge.s32.totalorder %s2661_s12, 2 }
 0x20d   : > { %s3369_s23 = sld [smem:[#allocation27_spill]] }
 0x212   : > { %s1523_s24 = sand.u32 1, %s3368_s30  }
 0x213   : > { %p3370_p13 = scmp.ne.s32.totalorder %s3369_s23, 0  ;;  %s1524_s1 = scalar_lea.sflag [#allocation4], %s1523_s24 }
 0x215   : > { %p2247_p3 = pnand %p2263_p9, %p3370_p13 }
 0x217   : > { %p2248_p1 = pneg %p2247_p3 }
 0x219   : > { %2624 = dma.done.wait (%p2248_p1), %s1524_s1, 4096  }
 0x21a   : > { %2626 = vsyncadd (%p2248_p1), %s1524_s1, 4294963200  ;;  %s3371_s19 = sadd.s32 4294967294, %s2661_s12  }
 0x21b   : > { %s1532_s3 = sand.u32 1, %s3371_s19  }
 0x21c   : > { %s1533_s20 = scalar_lea.sflag [#allocation15], %s1532_s3 }
 0x21d   : > { %2628 = dma.done.wait (%p2248_p1), %s1533_s20, 8192  }
 0x21e   : > { %2630 = vsyncadd (%p2248_p1), %s1533_s20, 4294959104  ;;  %s33_s12 = sadd.s32 1, %s2661_s12   ;;  %s3372_s30 = sld [smem:[#allocation25_spill]] }
 0x21f   : > { %p30_p10 = scmp.ge.s32.totalorder %s33_s12, 6   ;;  %s3373_s10 = sld [smem:[#allocation28_spill]] }
 0x220   : > { %s3374_s16 = sld [smem:[#allocation29_spill]]  ;;  %s3375_s27 = smov %s2637_s28 }
 0x221   : > { %s3376_s28 = smov %s2641_s29  ;;  %s3377_s29 = smov %s2856_s18 }
 0x222   : > { %s3378_s9 = smov %s2657_s11  ;;  %32 = sbr.rel (!%p30_p10) target bundleno = 20 (0x14), region = 157 }
 0x226   : > { %s3379_s11 = smov %s3374_s16 }
 0x227   :  { %1547 = vsyncpa [#allocation3], 1 }
 0x228   :  { %1549 = vsyncpa [#allocation3 + $0x1], 1 }
 0x229   :  { %1550 = vsyncpa [#allocation6], 1 }
 0x22a   :  { %1552 = vsyncpa [#allocation6 + $0x1], 1 }
 0x22b   :  { %1553 = vsyncpa [#allocation9], 1 }
 0x22c   :  { %1554 = vsyncpa [#allocation12], 1 }
 0x22d   :  { %1555 = vsyncpa [#allocation4], 1 }
 0x22e   :  { %1557 = vsyncpa [#allocation4 + $0x1], 1 }
 0x22f   :  { %1558 = vsyncpa [#allocation15], 1 }
 0x230   :  { %1560 = vsyncpa [#allocation15 + $0x1], 1 }

</bundles_post_ra>
